<compile_context>
chip_gen: v6e
topology: v6e:2x2x1
jax: 0.10.0
libtpu: 0.0.40
codegen_flags: <defaults>
</compile_context>

<pallas_src>
import jax
import jax.numpy as jnp
from jax import lax
from jax.experimental import pallas as pl
from jax.experimental.pallas import tpu as pltpu

C, H, W = 2, 16, 16      # channels / height / width
CHW = C * H * W          # 512 = 4 x 128 lanes (lane-dense)
K = 9                    # 1-D conv tap count
PAD = K // 2             # 'same' padding
EPS = 1e-5               # BatchNorm eps


# --------------------------------------------------------------------------- #
# Wrapper-side constant construction (plain JAX, runs once, outside the grid). #
# --------------------------------------------------------------------------- #
def _band_toeplitz(taps, length):
    """T[a, o] = taps[a - o + PAD] for 0 <= a - o + PAD < K, else 0."""
    idx = jnp.arange(length)
    d = idx[:, None] - idx[None, :] + PAD
    valid = (d >= 0) & (d < K)
    return jnp.where(valid, taps[jnp.clip(d, 0, K - 1)], 0.0).astype(jnp.float32)


def _build_w_conv_matrix(w1):
    """(CHW, CHW) matrix M so that x_flat @ M == Conv2d(2,2,[1,9],pad=(0,4))(x).

    Flat index order is (c, h, w). Block [ci -> co] = kron(I_H, Toeplitz_W)."""
    eye_h = jnp.eye(H, dtype=jnp.float32)
    rows = []
    for ci in range(C):
        cols = [jnp.kron(eye_h, _band_toeplitz(w1[co, ci, 0, :], W))
                for co in range(C)]
        rows.append(jnp.concatenate(cols, axis=1))
    return jnp.concatenate(rows, axis=0)


def _build_h_conv_matrix(w2):
    """(CHW, CHW) matrix M so that y_flat @ M == Conv2d(2,2,[9,1],pad=(4,0))(y).

    Block [ci -> co] = kron(Toeplitz_H, I_W)."""
    eye_w = jnp.eye(W, dtype=jnp.float32)
    rows = []
    for ci in range(C):
        cols = [jnp.kron(_band_toeplitz(w2[co, ci, :, 0], H), eye_w)
                for co in range(C)]
        rows.append(jnp.concatenate(cols, axis=1))
    return jnp.concatenate(rows, axis=0)


# --------------------------------------------------------------------------- #
# Pallas kernel: lane-dense (B_TILE, 512) rows, two MXU matmuls + VPU epilogue #
# --------------------------------------------------------------------------- #
def acr_block_kernel(x_ref, t1_ref, t2_ref, b1_ref, p1_ref, b2_ref, p2_ref,
                     o_ref):
    x = x_ref[...]                                              # (bt, CHW) f32
    # ConvBN1: 1x9 conv + channel mix + folded BN1 scale (inside t1) + bias.
    y = jnp.dot(x, t1_ref[...], preferred_element_type=jnp.float32) + b1_ref[...]
    # PReLU1 (per-channel slope broadcast as a lane-dense row).
    y = jnp.where(y >= 0.0, y, p1_ref[...] * y)
    # ConvBN2: 9x1 conv + channel mix + folded BN2 scale (inside t2) + bias.
    r = jnp.dot(y, t2_ref[...], preferred_element_type=jnp.float32) + b2_ref[...]
    # Identity + residual, PReLU2.
    z = x + r
    o_ref[...] = jnp.where(z >= 0.0, z, p2_ref[...] * z)


def acr_encoder_block(x, w1, s1, b1, p1, w2, s2, b2, p2, *, b_tile=2048):
    """x: (N, C, H, W) f32. s*/b* are the eval-mode folded BN scale/bias."""
    n = x.shape[0]
    x2 = x.reshape(n, CHW)

    # Batch tile: biggest block that fits comfortably in VMEM on all gens;
    # pad N up to a multiple of the tile (padded rows are discarded).
    if n <= b_tile:
        bt, n_pad = n, n
    else:
        bt = max(8, (b_tile // 8) * 8)
        n_pad = pl.cdiv(n, bt) * bt
    if n_pad != n:
        x2 = jnp.pad(x2, ((0, n_pad - n), (0, 0)))

    # Constant conv matrices with BN scale folded into the columns; biases and
    # PReLU slopes as (1, CHW) lane-dense rows (resident across the grid).
    t1 = _build_w_conv_matrix(w1) * jnp.repeat(s1, H * W)[None, :]
    t2 = _build_h_conv_matrix(w2) * jnp.repeat(s2, H * W)[None, :]
    b1r = jnp.repeat(b1, H * W)[None, :].astype(jnp.float32)
    p1r = jnp.repeat(p1, H * W)[None, :].astype(jnp.float32)
    b2r = jnp.repeat(b2, H * W)[None, :].astype(jnp.float32)
    p2r = jnp.repeat(p2, H * W)[None, :].astype(jnp.float32)

    resident = lambda i: (0, 0)
    out2 = pl.pallas_call(
        acr_block_kernel,
        out_shape=jax.ShapeDtypeStruct((n_pad, CHW), jnp.float32),
        grid=(n_pad // bt,),
        in_specs=[pl.BlockSpec((bt, CHW), lambda i: (i, 0)),
                  pl.BlockSpec((CHW, CHW), resident),
                  pl.BlockSpec((CHW, CHW), resident),
                  pl.BlockSpec((1, CHW), resident),
                  pl.BlockSpec((1, CHW), resident),
                  pl.BlockSpec((1, CHW), resident),
                  pl.BlockSpec((1, CHW), resident)],
        out_specs=pl.BlockSpec((bt, CHW), lambda i: (i, 0)),
        compiler_params=pltpu.CompilerParams(
            dimension_semantics=("parallel",),
            vmem_limit_bytes=48 * 1024 * 1024),
    )(x2, t1, t2, b1r, p1r, b2r, p2r)

    return out2[:n].reshape(n, C, H, W)


# --------------------------------------------------------------------------- #
# Pure-JAX reference mirroring the PyTorch forward (eval-mode BN folded).      #
# --------------------------------------------------------------------------- #
def ref_forward(x, w1, s1, b1, p1, w2, s2, b2, p2):
    dn = lax.conv_dimension_numbers(x.shape, w1.shape, ("NCHW", "OIHW", "NCHW"))
    y = lax.conv_general_dilated(x, w1, (1, 1), [(0, 0), (PAD, PAD)],
                                 dimension_numbers=dn,
                                 precision=lax.Precision.HIGHEST)
    y = y * s1[None, :, None, None] + b1[None, :, None, None]
    y = jnp.where(y >= 0, y, p1[None, :, None, None] * y)
    dn2 = lax.conv_dimension_numbers(y.shape, w2.shape, ("NCHW", "OIHW", "NCHW"))
    r = lax.conv_general_dilated(y, w2, (1, 1), [(PAD, PAD), (0, 0)],
                                 dimension_numbers=dn2,
                                 precision=lax.Precision.HIGHEST)
    r = r * s2[None, :, None, None] + b2[None, :, None, None]
    z = x + r
    return jnp.where(z >= 0, z, p2[None, :, None, None] * z)


if __name__ == "__main__":
    key = jax.random.PRNGKey(0)
    ks = jax.random.split(key, 12)

    # Deterministic synthetic parameters (shapes from the module __init__).
    w1 = (0.1 * jax.random.normal(ks[0], (C, C, 1, K))).astype(jnp.float32)  # conv_bn1.conv
    w2 = (0.1 * jax.random.normal(ks[1], (C, C, K, 1))).astype(jnp.float32)  # conv_bn2.conv
    g1 = (1.0 + 0.1 * jax.random.normal(ks[2], (C,))).astype(jnp.float32)    # bn1 gamma
    be1 = (0.1 * jax.random.normal(ks[3], (C,))).astype(jnp.float32)         # bn1 beta
    mu1 = (0.1 * jax.random.normal(ks[4], (C,))).astype(jnp.float32)         # bn1 running_mean
    var1 = (0.5 + jnp.abs(jax.random.normal(ks[5], (C,)))).astype(jnp.float32)
    g2 = (1.0 + 0.1 * jax.random.normal(ks[6], (C,))).astype(jnp.float32)    # bn2 gamma
    be2 = (0.1 * jax.random.normal(ks[7], (C,))).astype(jnp.float32)         # bn2 beta
    mu2 = (0.1 * jax.random.normal(ks[8], (C,))).astype(jnp.float32)         # bn2 running_mean
    var2 = (0.5 + jnp.abs(jax.random.normal(ks[9], (C,)))).astype(jnp.float32)
    p1 = jnp.full((C,), 0.3, jnp.float32)                                    # PReLU1 (init=0.3)
    p2 = jnp.full((C,), 0.3, jnp.float32)                                    # PReLU2 (init=0.3)

    # Fold BatchNorm (eval mode) into per-channel scale/bias.
    s1 = g1 / jnp.sqrt(var1 + EPS)
    b1 = be1 - mu1 * s1
    s2 = g2 / jnp.sqrt(var2 + EPS)
    b2 = be2 - mu2 * s2

    # Default MXU precision uses bf16 passes for f32 operands; for a 9-tap,
    # 2-channel conv the resulting error stays far below this tolerance.
    TOL = 5e-2

    # Primary small test: batch=2, NCHW (matches the module's 2 channels).
    x = jax.random.normal(ks[10], (2, C, H, W), jnp.float32)
    out = jax.block_until_ready(
        acr_encoder_block(x, w1, s1, b1, p1, w2, s2, b2, p2))
    ref = jax.block_until_ready(ref_forward(x, w1, s1, b1, p1, w2, s2, b2, p2))
    assert out.shape == ref.shape and out.dtype == ref.dtype
    assert jnp.allclose(out, ref, rtol=TOL, atol=TOL), (
        float(jnp.max(jnp.abs(out - ref))))

    # Secondary test exercising the multi-block grid + batch padding path.
    xb = jax.random.normal(ks[11], (20, C, H, W), jnp.float32)
    outb = jax.block_until_ready(
        acr_encoder_block(xb, w1, s1, b1, p1, w2, s2, b2, p2, b_tile=8))
    refb = jax.block_until_ready(ref_forward(xb, w1, s1, b1, p1, w2, s2, b2, p2))
    assert outb.shape == refb.shape
    assert jnp.allclose(outb, refb, rtol=TOL, atol=TOL), (
        float(jnp.max(jnp.abs(outb - refb))))

    print("KERNEL_OK")
</pallas_src>

<mosaic_0001>
module attributes {stable_mosaic.version = 11 : i64} {
  func.func @acr_block_kernel(%arg0: i32, %arg1: memref<2x512xf32, #tpu.memory_space<vmem>>, %arg2: memref<512x512xf32, #tpu.memory_space<vmem>>, %arg3: memref<512x512xf32, #tpu.memory_space<vmem>>, %arg4: memref<1x512xf32, #tpu.memory_space<vmem>>, %arg5: memref<1x512xf32, #tpu.memory_space<vmem>>, %arg6: memref<1x512xf32, #tpu.memory_space<vmem>>, %arg7: memref<1x512xf32, #tpu.memory_space<vmem>>, %arg8: memref<2x512xf32, #tpu.memory_space<vmem>>) attributes {dimension_semantics = [#tpu.dimension_semantics<parallel>], iteration_bounds = array<i64: 1>, scalar_prefetch = 0 : i64, scratch_operands = 0 : i64, tpu.core_type = #tpu.core_type<tc>, window_params = [{transform_indices = @transform_0, window_bounds = array<i64: 2, 512>}, {pipeline_mode = #tpu.pipeline_mode<synchronous>, transform_indices = @transform_1, window_bounds = array<i64: 512, 512>}, {pipeline_mode = #tpu.pipeline_mode<synchronous>, transform_indices = @transform_2, window_bounds = array<i64: 512, 512>}, {pipeline_mode = #tpu.pipeline_mode<synchronous>, transform_indices = @transform_3, window_bounds = array<i64: 1, 512>}, {pipeline_mode = #tpu.pipeline_mode<synchronous>, transform_indices = @transform_4, window_bounds = array<i64: 1, 512>}, {pipeline_mode = #tpu.pipeline_mode<synchronous>, transform_indices = @transform_5, window_bounds = array<i64: 1, 512>}, {pipeline_mode = #tpu.pipeline_mode<synchronous>, transform_indices = @transform_6, window_bounds = array<i64: 1, 512>}, {transform_indices = @transform_7, window_bounds = array<i64: 2, 512>}]} {
    %c0 = arith.constant 0 : index
    %c0_0 = arith.constant 0 : index
    %0 = vector.load %arg1[%c0, %c0_0] : memref<2x512xf32, #tpu.memory_space<vmem>>, vector<2x512xf32>
    %c0_1 = arith.constant 0 : index
    %c0_2 = arith.constant 0 : index
    %1 = vector.load %arg2[%c0_1, %c0_2] : memref<512x512xf32, #tpu.memory_space<vmem>>, vector<512x512xf32>
    %cst = arith.constant dense<0.000000e+00> : vector<2x512xf32>
    %2 = tpu.matmul %0, %1, %cst {dimension_numbers = #tpu.dot_dimension_numbers<[1], [0], [0], [1], [0, 0, 1, 1], [], []>} : vector<2x512xf32>, vector<512x512xf32>, vector<2x512xf32> -> vector<2x512xf32>
    %c0_3 = arith.constant 0 : index
    %c0_4 = arith.constant 0 : index
    %3 = vector.load %arg4[%c0_3, %c0_4] : memref<1x512xf32, #tpu.memory_space<vmem>>, vector<1x512xf32>
    %4 = vector.broadcast %3 : vector<1x512xf32> to vector<2x512xf32>
    %5 = arith.addf %2, %4 : vector<2x512xf32>
    %cst_5 = arith.constant 0.000000e+00 : f32
    %6 = vector.broadcast %cst_5 : f32 to vector<2x512xf32>
    %7 = arith.cmpf oge, %5, %6 : vector<2x512xf32>
    %c0_6 = arith.constant 0 : index
    %c0_7 = arith.constant 0 : index
    %8 = vector.load %arg5[%c0_6, %c0_7] : memref<1x512xf32, #tpu.memory_space<vmem>>, vector<1x512xf32>
    %9 = vector.broadcast %8 : vector<1x512xf32> to vector<2x512xf32>
    %10 = arith.mulf %9, %5 : vector<2x512xf32>
    %11 = arith.select %7, %5, %10 : vector<2x512xi1>, vector<2x512xf32>
    %c0_8 = arith.constant 0 : index
    %c0_9 = arith.constant 0 : index
    %12 = vector.load %arg3[%c0_8, %c0_9] : memref<512x512xf32, #tpu.memory_space<vmem>>, vector<512x512xf32>
    %cst_10 = arith.constant dense<0.000000e+00> : vector<2x512xf32>
    %13 = tpu.matmul %11, %12, %cst_10 {dimension_numbers = #tpu.dot_dimension_numbers<[1], [0], [0], [1], [0, 0, 1, 1], [], []>} : vector<2x512xf32>, vector<512x512xf32>, vector<2x512xf32> -> vector<2x512xf32>
    %c0_11 = arith.constant 0 : index
    %c0_12 = arith.constant 0 : index
    %14 = vector.load %arg6[%c0_11, %c0_12] : memref<1x512xf32, #tpu.memory_space<vmem>>, vector<1x512xf32>
    %15 = vector.broadcast %14 : vector<1x512xf32> to vector<2x512xf32>
    %16 = arith.addf %13, %15 : vector<2x512xf32>
    %17 = arith.addf %0, %16 : vector<2x512xf32>
    %cst_13 = arith.constant 0.000000e+00 : f32
    %18 = vector.broadcast %cst_13 : f32 to vector<2x512xf32>
    %19 = arith.cmpf oge, %17, %18 : vector<2x512xf32>
    %c0_14 = arith.constant 0 : index
    %c0_15 = arith.constant 0 : index
    %20 = vector.load %arg7[%c0_14, %c0_15] : memref<1x512xf32, #tpu.memory_space<vmem>>, vector<1x512xf32>
    %21 = vector.broadcast %20 : vector<1x512xf32> to vector<2x512xf32>
    %22 = arith.mulf %21, %17 : vector<2x512xf32>
    %23 = arith.select %19, %17, %22 : vector<2x512xi1>, vector<2x512xf32>
    %c0_16 = arith.constant 0 : index
    %c0_17 = arith.constant 0 : index
    %24 = vector.load %arg8[%c0_16, %c0_17] : memref<2x512xf32, #tpu.memory_space<vmem>>, vector<2x512xf32>
    tpu.vector_store %arg8[%c0_16, %c0_17], %23 {strides = array<i32>} : memref<2x512xf32, #tpu.memory_space<vmem>>, vector<2x512xf32>,
    return
  }
  func.func @transform_0(%arg0: i32) -> (i32, i32) {
    %c0_i32 = arith.constant 0 : i32
    %c0_i32_0 = arith.constant 0 : i32
    return %arg0, %c0_i32 : i32, i32
  }
  func.func @transform_1(%arg0: i32) -> (i32, i32) {
    %c0_i32 = arith.constant 0 : i32
    %c0_i32_0 = arith.constant 0 : i32
    %c0_i32_1 = arith.constant 0 : i32
    return %c0_i32, %c0_i32_0 : i32, i32
  }
  func.func @transform_2(%arg0: i32) -> (i32, i32) {
    %c0_i32 = arith.constant 0 : i32
    %c0_i32_0 = arith.constant 0 : i32
    %c0_i32_1 = arith.constant 0 : i32
    return %c0_i32, %c0_i32_0 : i32, i32
  }
  func.func @transform_3(%arg0: i32) -> (i32, i32) {
    %c0_i32 = arith.constant 0 : i32
    %c0_i32_0 = arith.constant 0 : i32
    %c0_i32_1 = arith.constant 0 : i32
    return %c0_i32, %c0_i32_0 : i32, i32
  }
  func.func @transform_4(%arg0: i32) -> (i32, i32) {
    %c0_i32 = arith.constant 0 : i32
    %c0_i32_0 = arith.constant 0 : i32
    %c0_i32_1 = arith.constant 0 : i32
    return %c0_i32, %c0_i32_0 : i32, i32
  }
  func.func @transform_5(%arg0: i32) -> (i32, i32) {
    %c0_i32 = arith.constant 0 : i32
    %c0_i32_0 = arith.constant 0 : i32
    %c0_i32_1 = arith.constant 0 : i32
    return %c0_i32, %c0_i32_0 : i32, i32
  }
  func.func @transform_6(%arg0: i32) -> (i32, i32) {
    %c0_i32 = arith.constant 0 : i32
    %c0_i32_0 = arith.constant 0 : i32
    %c0_i32_1 = arith.constant 0 : i32
    return %c0_i32, %c0_i32_0 : i32, i32
  }
  func.func @transform_7(%arg0: i32) -> (i32, i32) {
    %c0_i32 = arith.constant 0 : i32
    %c0_i32_0 = arith.constant 0 : i32
    return %arg0, %c0_i32 : i32, i32
  }
}

</mosaic_0001>

<bundles_post_ra>
// kernel: tpu_custom_call.1
= control target key start
LH: loop header
LB: loop body
LE: loop exit
PB: predicated region body
PF: predicated region fallthrough
CT: control target
= control target key end

     0   :  { %12 = vsyncpa [#allocation3], 0  ;;  %s1682_s0 = inlined_call_operand.hbm [shape: f32[2,512], index: 0, kind: input, shape index: {}]   ;;  %s1683_s1 = inlined_call_operand.hbm [shape: f32[512,512], index: 1, kind: input, shape index: {}]   ;;  %s1684_s2 = inlined_call_operand.hbm [shape: f32[512,512], index: 2, kind: input, shape index: {}]   ;;  %s1685_s3 = inlined_call_operand.vmem [shape: f32[1,512], index: 3, kind: input, shape index: {}]   ;;  %s1686_s4 = inlined_call_operand.hbm [shape: f32[1,512], index: 4, kind: input, shape index: {}]   ;;  %s1687_s5 = inlined_call_operand.vmem [shape: f32[1,512], index: 5, kind: input, shape index: {}]   ;;  %s1688_s6 = inlined_call_operand.hbm [shape: f32[1,512], index: 6, kind: input, shape index: {}]   ;;  %s1689_s7 = inlined_call_operand.hbm [shape: f32[2,512], index: 7, kind: output, shape index: {}]  }
   0x1   :  { %13 = vsyncpa [#allocation6], 0 }
   0x2   :  { %14 = vsyncpa [#allocation9], 0 }
   0x3   :  { %15 = vsyncpa [#allocation4], 0  ;;  %s1522_s24 = smov [#allocation5]  }
   0x4   :  { %s31_s25 = sshll.u32 %s1522_s24, 4  ;;  %s32_s25 = int_to_ptr.vmem [resolvable:$true] %s31_s25 }
   0x5   :  { %s1402_s26 = scalar_lea.vmem %s32_s25, 32768  ;;  %p1407_p1 = scmp.lt.s32.totalorder %s32_s25, %s32_s25 }
   0x6   :  { %p1403_p0 = scmp.ne.s32.totalorder %s32_s25, %s1402_s26  ;;  %p1408_p2 = scmp.lt.s32.totalorder %s1402_s26, %s1402_s26 }
   0x8   :  { %p1409_p3 = por %p1408_p2, %p1407_p1 }
   0xa   :  { %p1410_p4 = pnand %p1409_p3, %p1403_p0 }
   0xc   :  { %1413 = shalt.err (!%p1410_p4)
}
   0xd   :  { %s1523_s27 = smov 512   ;;  %s1524_s28 = smov 32  }
   0xe   :  { %37 = dma.hbm_to_vmem [thread:$0]  %s1683_s1, 32768, %s32_s25, [#allocation6], %s1523_s27, %s1523_s27, %s1524_s28  }
   0xf   :  { %s1525_s8 = smov [#allocation8]   ;;  %s1526_s10 = smov [#allocation2]  }
  0x10   :  { %s58_s9 = sshll.u32 %s1525_s8, 4  ;;  %s22_s11 = sshll.u32 %s1526_s10, 4  ;;  %s59_s9 = int_to_ptr.vmem [resolvable:$true] %s58_s9  ;;  %s23_s11 = int_to_ptr.vmem [resolvable:$true] %s22_s11 }
  0x11   :  { %s1422_s12 = scalar_lea.vmem %s59_s9, 64  ;;  %p1427_p6 = scmp.lt.s32.totalorder %s59_s9, %s59_s9 }
  0x12   :  { %p1423_p5 = scmp.ne.s32.totalorder %s59_s9, %s1422_s12  ;;  %p1428_p7 = scmp.lt.s32.totalorder %s1422_s12, %s1422_s12 }
  0x14   :  { %p1429_p8 = por %p1428_p7, %p1427_p6 }
  0x16   :  { %p1430_p9 = pnand %p1429_p8, %p1423_p5 }
  0x18   :  { %1433 = shalt.err (!%p1430_p9)
}
  0x19   :  { %61 = dma.hbm_to_vmem [thread:$0]  %s1686_s4, 64, %s59_s9, [#allocation9]  }
  0x1a   :  { %s1442_s15 = scalar_lea.vmem %s23_s11, 128  ;;  %p1447_p11 = scmp.lt.s32.totalorder %s23_s11, %s23_s11 }
  0x1b   :  { %p1443_p10 = scmp.ne.s32.totalorder %s23_s11, %s1442_s15  ;;  %p1448_p12 = scmp.lt.s32.totalorder %s1442_s15, %s1442_s15 }
  0x1d   :  { %p1449_p13 = por %p1448_p12, %p1447_p11 }
  0x1f   :  { %p1450_p0 = pnand %p1449_p13, %p1443_p10 }
  0x21   :  { %1453 = shalt.err (!%p1450_p0)
}
  0x22   :  { %25 = dma.hbm_to_vmem [thread:$0]  %s1682_s0, 128, %s23_s11, [#allocation3]  }
  0x23   :  { %s1527_s17 = smov [#allocation7]   ;;  %s1528_s19 = smov [#allocation10]  }
  0x24   :  { %s43_s18 = sshll.u32 %s1527_s17, 4  ;;  %s70_s20 = sshll.u32 %s1528_s19, 4  ;;  %s44_s18 = int_to_ptr.vmem [resolvable:$true] %s43_s18  ;;  %s71_s20 = int_to_ptr.vmem [resolvable:$true] %s70_s20 }
  0x25   :  { %s1462_s21 = scalar_lea.vmem %s44_s18, 32768  ;;  %p1467_p2 = scmp.lt.s32.totalorder %s44_s18, %s44_s18 }
  0x26   :  { %p1463_p1 = scmp.ne.s32.totalorder %s44_s18, %s1462_s21  ;;  %p1468_p3 = scmp.lt.s32.totalorder %s1462_s21, %s1462_s21 }
  0x28   :  { %p1469_p4 = por %p1468_p3, %p1467_p2 }
  0x2a   :  { %p1470_p5 = pnand %p1469_p4, %p1463_p1 }
  0x2c   :  { %1473 = shalt.err (!%p1470_p5)
}
  0x2d   :  { %49 = dma.hbm_to_vmem [thread:$0]  %s1684_s2, 32768, %s44_s18, [#allocation6], %s1523_s27, %s1523_s27, %s1524_s28  }
  0x2e   :  { %s1482_s0 = scalar_lea.vmem %s71_s20, 64  ;;  %p1487_p7 = scmp.lt.s32.totalorder %s71_s20, %s71_s20 }
  0x2f   :  { %p1483_p6 = scmp.ne.s32.totalorder %s71_s20, %s1482_s0  ;;  %p1488_p8 = scmp.lt.s32.totalorder %s1482_s0, %s1482_s0 }
  0x31   :  { %p1489_p9 = por %p1488_p8, %p1487_p7 }
  0x33   :  { %p1490_p10 = pnand %p1489_p9, %p1483_p6 }
  0x35   :  { %1493 = shalt.err (!%p1490_p10)
}
  0x36   :  { %73 = dma.hbm_to_vmem [thread:$0]  %s1688_s6, 64, %s71_s20, [#allocation9]  }
  0x37   :  { %1514 = dma.done.wait [#allocation3], 128  }
  0x38   :  { %1515 = vsyncadd [#allocation3], 4294967168 }
  0x39   :  { %1516 = dma.done.wait [#allocation6], 65536  }
  0x3a   :  { %1517 = vsyncadd [#allocation6], 4294901760 }
  0x3b   :  { %1518 = dma.done.wait [#allocation9], 128  }
  0x3c   :  { %1519 = vsyncadd [#allocation9], 4294967168  ;;  %v151_v0 = vld [vmem:[#allocation5 + $0x1e8] sm:$0xff]  ;;  %v150_v2 = vld [vmem:[#allocation5 + $0x1e0] sm:$0xff] }
  0x3d   :  { %v279_v1 = vld [vmem:[#allocation5 + $0x5e8] sm:$0xff]  ;;  %390 = vmatprep.subr.mxu0 %v151_v0  ;;  %v278_v3 = vld [vmem:[#allocation5 + $0x5e0] sm:$0xff] }
  0x3e   :  { %461 = vmatprep.subr.mxu1 %v279_v1  ;;  %v147_v4 = vld [vmem:[#allocation5 + $0x1c8] sm:$0xff]  ;;  %391 = vmatpush1.msra.mxu0 %v150_v2  ;;  %v146_v6 = vld [vmem:[#allocation5 + $0x1c0] sm:$0xff] }
  0x3f   :  { %v275_v5 = vld [vmem:[#allocation5 + $0x5c8] sm:$0xff]  ;;  %462 = vmatpush1.msra.mxu1 %v278_v3  ;;  %v274_v7 = vld [vmem:[#allocation5 + $0x5c0] sm:$0xff]  ;;  %392 = vmatprep.subr.mxu0 %v147_v4 }
  0x40   :  { %v143_v8 = vld [vmem:[#allocation5 + $0x1a8] sm:$0xff]  ;;  %463 = vmatprep.subr.mxu1 %v275_v5  ;;  %v142_v10 = vld [vmem:[#allocation5 + $0x1a0] sm:$0xff]  ;;  %393 = vmatpush1.msra.mxu0 %v146_v6 }
  0x41   :  { %v271_v9 = vld [vmem:[#allocation5 + $0x5a8] sm:$0xff]  ;;  %v270_v11 = vld [vmem:[#allocation5 + $0x5a0] sm:$0xff]  ;;  %464 = vmatpush1.msra.mxu1 %v274_v7  ;;  %394 = vmatprep.subr.mxu0 %v143_v8 }
  0x42   :  { %v139_v12 = vld [vmem:[#allocation5 + $0x188] sm:$0xff]  ;;  %465 = vmatprep.subr.mxu1 %v271_v9  ;;  %v138_v14 = vld [vmem:[#allocation5 + $0x180] sm:$0xff]  ;;  %395 = vmatpush1.msra.mxu0 %v142_v10 }
  0x43   :  { %v267_v13 = vld [vmem:[#allocation5 + $0x588] sm:$0xff]  ;;  %v266_v15 = vld [vmem:[#allocation5 + $0x580] sm:$0xff]  ;;  %466 = vmatpush1.msra.mxu1 %v270_v11  ;;  %396 = vmatprep.subr.mxu0 %v139_v12 }
  0x44   :  { %v135_v16 = vld [vmem:[#allocation5 + $0x168] sm:$0xff]  ;;  %467 = vmatprep.subr.mxu1 %v267_v13  ;;  %v134_v18 = vld [vmem:[#allocation5 + $0x160] sm:$0xff]  ;;  %397 = vmatpush1.msra.mxu0 %v138_v14 }
  0x45   :  { %v263_v17 = vld [vmem:[#allocation5 + $0x568] sm:$0xff]  ;;  %v262_v19 = vld [vmem:[#allocation5 + $0x560] sm:$0xff]  ;;  %468 = vmatpush1.msra.mxu1 %v266_v15  ;;  %398 = vmatprep.subr.mxu0 %v135_v16 }
  0x46   :  { %v131_v20 = vld [vmem:[#allocation5 + $0x148] sm:$0xff]  ;;  %469 = vmatprep.subr.mxu1 %v263_v17  ;;  %v130_v22 = vld [vmem:[#allocation5 + $0x140] sm:$0xff]  ;;  %399 = vmatpush1.msra.mxu0 %v134_v18 }
  0x47   :  { %v259_v21 = vld [vmem:[#allocation5 + $0x548] sm:$0xff]  ;;  %v258_v23 = vld [vmem:[#allocation5 + $0x540] sm:$0xff]  ;;  %470 = vmatpush1.msra.mxu1 %v262_v19  ;;  %400 = vmatprep.subr.mxu0 %v131_v20 }
  0x48   :  { %v127_v24 = vld [vmem:[#allocation5 + $0x128] sm:$0xff]  ;;  %471 = vmatprep.subr.mxu1 %v259_v21  ;;  %v126_v26 = vld [vmem:[#allocation5 + $0x120] sm:$0xff]  ;;  %401 = vmatpush1.msra.mxu0 %v130_v22 }
  0x49   :  { %v255_v25 = vld [vmem:[#allocation5 + $0x528] sm:$0xff]  ;;  %v254_v27 = vld [vmem:[#allocation5 + $0x520] sm:$0xff]  ;;  %472 = vmatpush1.msra.mxu1 %v258_v23  ;;  %402 = vmatprep.subr.mxu0 %v127_v24 }
  0x4a   :  { %v123_v28 = vld [vmem:[#allocation5 + $0x108] sm:$0xff]  ;;  %473 = vmatprep.subr.mxu1 %v255_v25  ;;  %v122_v30 = vld [vmem:[#allocation5 + $0x100] sm:$0xff]  ;;  %403 = vmatpush1.msra.mxu0 %v126_v26 }
  0x4b   :  { %v251_v29 = vld [vmem:[#allocation5 + $0x508] sm:$0xff]  ;;  %v250_v31 = vld [vmem:[#allocation5 + $0x500] sm:$0xff]  ;;  %474 = vmatpush1.msra.mxu1 %v254_v27  ;;  %404 = vmatprep.subr.mxu0 %v123_v28 }
  0x4c   :  { %v119_v32 = vld [vmem:[#allocation5 + $0xe8] sm:$0xff]  ;;  %475 = vmatprep.subr.mxu1 %v251_v29  ;;  %v118_v34 = vld [vmem:[#allocation5 + $0xe0] sm:$0xff]  ;;  %405 = vmatpush1.msra.mxu0 %v122_v30  ;;  %v348_v30 = vlaneseq }
  0x4d   :  { %v247_v33 = vld [vmem:[#allocation5 + $0x4e8] sm:$0xff]  ;;  %v246_v35 = vld [vmem:[#allocation5 + $0x4e0] sm:$0xff]  ;;  %476 = vmatpush1.msra.mxu1 %v250_v31  ;;  %406 = vmatprep.subr.mxu0 %v119_v32  ;;  %v1529_v31 = vmov 1983009808  }
  0x4e   :  { %v115_v36 = vld [vmem:[#allocation5 + $0xc8] sm:$0xff]  ;;  %477 = vmatprep.subr.mxu1 %v247_v33  ;;  %v114_v38 = vld [vmem:[#allocation5 + $0xc0] sm:$0xff]  ;;  %407 = vmatpush1.msra.mxu0 %v118_v34  ;;  %v371_v32 = vunpack.c.l.s4 %v1529_v31  ;;  %v264_v31 = vld [vmem:[#allocation5 + $0x570] sm:$0xff] }
  0x4f   :  { %v243_v37 = vld [vmem:[#allocation5 + $0x4c8] sm:$0xff]  ;;  %v242_v39 = vld [vmem:[#allocation5 + $0x4c0] sm:$0xff]  ;;  %478 = vmatpush1.msra.mxu1 %v246_v35  ;;  %408 = vmatprep.subr.mxu0 %v115_v36 }
  0x50   :  { %v111_v40 = vld [vmem:[#allocation5 + $0xa8] sm:$0xff]  ;;  %479 = vmatprep.subr.mxu1 %v243_v37  ;;  %v110_v42 = vld [vmem:[#allocation5 + $0xa0] sm:$0xff]  ;;  %409 = vmatpush1.msra.mxu0 %v114_v38 }
  0x51   :  { %v239_v41 = vld [vmem:[#allocation5 + $0x4a8] sm:$0xff]  ;;  %v238_v43 = vld [vmem:[#allocation5 + $0x4a0] sm:$0xff]  ;;  %480 = vmatpush1.msra.mxu1 %v242_v39  ;;  %410 = vmatprep.subr.mxu0 %v111_v40 }
  0x52   :  { %v107_v44 = vld [vmem:[#allocation5 + $0x88] sm:$0xff]  ;;  %481 = vmatprep.subr.mxu1 %v239_v41  ;;  %v106_v46 = vld [vmem:[#allocation5 + $0x80] sm:$0xff]  ;;  %411 = vmatpush1.msra.mxu0 %v110_v42  ;;  %v1592_v41 = vshrl.u32 %v348_v30, 7  ;;  %v372_v42 = vunpack.c.0.s8 %v371_v32  ;;  %v136_v30 = vld [vmem:[#allocation5 + $0x170] sm:$0xff] }
  0x53   :  { %v235_v45 = vld [vmem:[#allocation5 + $0x488] sm:$0xff]  ;;  %v234_v47 = vld [vmem:[#allocation5 + $0x480] sm:$0xff]  ;;  %482 = vmatpush1.msra.mxu1 %v238_v43  ;;  %412 = vmatprep.subr.mxu0 %v107_v44  ;;  %v133_v32 = vld [vmem:[#allocation5 + $0x158] sm:$0xff] }
  0x54   :  { %v103_v48 = vld [vmem:[#allocation5 + $0x68] sm:$0xff]  ;;  %483 = vmatprep.subr.mxu1 %v235_v45  ;;  %v102_v50 = vld [vmem:[#allocation5 + $0x60] sm:$0xff]  ;;  %413 = vmatpush1.msra.mxu0 %v106_v46 }
  0x55   :  { %v231_v49 = vld [vmem:[#allocation5 + $0x468] sm:$0xff]  ;;  %v230_v51 = vld [vmem:[#allocation5 + $0x460] sm:$0xff]  ;;  %484 = vmatpush1.msra.mxu1 %v234_v47  ;;  %414 = vmatprep.subr.mxu0 %v103_v48 }
  0x56   :  { %v99_v52 = vld [vmem:[#allocation5 + $0x48] sm:$0xff]  ;;  %485 = vmatprep.subr.mxu1 %v231_v49  ;;  %v98_v54 = vld [vmem:[#allocation5 + $0x40] sm:$0xff]  ;;  %415 = vmatpush1.msra.mxu0 %v102_v50  ;;  %v89_v49 = vld [vmem:[#allocation2] sm:$0xff] }
  0x57   :  { %v227_v53 = vld [vmem:[#allocation5 + $0x448] sm:$0xff]  ;;  %v226_v55 = vld [vmem:[#allocation5 + $0x440] sm:$0xff]  ;;  %486 = vmatpush1.msra.mxu1 %v230_v51  ;;  %416 = vmatprep.subr.mxu0 %v99_v52  ;;  %v1595_v52 = vsub.s32 %v372_v42, %v1592_v41  ;;  %v253_v42 = vld [vmem:[#allocation5 + $0x518] sm:$0xff] }
  0x58   :  { %v95_v56 = vld [vmem:[#allocation5 + $0x28] sm:$0xff]  ;;  %487 = vmatprep.subr.mxu1 %v227_v53  ;;  %v94_v58 = vld [vmem:[#allocation5 + $0x20] sm:$0xff]  ;;  %417 = vmatpush1.msra.mxu0 %v98_v54 }
  0x59   :  { %v223_v57 = vld [vmem:[#allocation5 + $0x428] sm:$0xff]  ;;  %v222_v59 = vld [vmem:[#allocation5 + $0x420] sm:$0xff]  ;;  %488 = vmatpush1.msra.mxu1 %v226_v55  ;;  %418 = vmatprep.subr.mxu0 %v95_v56 }
  0x5a   :  { %v91_v60 = vld [vmem:[#allocation5 + $0x8] sm:$0xff]  ;;  %489 = vmatprep.subr.mxu1 %v223_v57  ;;  %v90_v62 = vld [vmem:[#allocation5] sm:$0xff]  ;;  %419 = vmatpush1.msra.mxu0 %v94_v58  ;;  %v369_v57 = vcombine.high %v89_v49, %v89_v49 }
  0x5b   :  { %v219_v61 = vld [vmem:[#allocation5 + $0x408] sm:$0xff]  ;;  %v218_v63 = vld [vmem:[#allocation5 + $0x400] sm:$0xff]  ;;  %490 = vmatpush1.msra.mxu1 %v222_v59  ;;  %420 = vmatprep.subr.mxu0 %v91_v60 }
  0x5c   :  { %v215_v0 = vld [vmem:[#allocation5 + $0x3e8] sm:$0xff]  ;;  %491 = vmatprep.subr.mxu1 %v219_v61  ;;  %v214_v2 = vld [vmem:[#allocation5 + $0x3e0] sm:$0xff]  ;;  %421 = vmatpush1.msra.mxu0 %v90_v62  ;;  %v1598_v62 = vrot.slane %v89_v49, %v1595_v52  ;;  %v117_v49 = vld [vmem:[#allocation5 + $0xd8] sm:$0xff] }
  0x5d   :  { %v343_v1 = vld [vmem:[#allocation5 + $0x7e8] sm:$0xff]  ;;  %v342_v3 = vld [vmem:[#allocation5 + $0x7e0] sm:$0xff]  ;;  %492 = vmatpush1.msra.mxu1 %v218_v63  ;;  %422 = vmatprep.subr.mxu0 %v215_v0 }
  0x5e   :  { %v211_v4 = vld [vmem:[#allocation5 + $0x3c8] sm:$0xff]  ;;  %493 = vmatprep.subr.mxu1 %v343_v1  ;;  %v210_v6 = vld [vmem:[#allocation5 + $0x3c0] sm:$0xff]  ;;  %423 = vmatpush2.msra.mxu0 %v214_v2 }
  0x5f   :  { %v339_v5 = vld [vmem:[#allocation5 + $0x7c8] sm:$0xff]  ;;  %v338_v7 = vld [vmem:[#allocation5 + $0x7c0] sm:$0xff]  ;;  %494 = vmatpush2.msra.mxu1 %v342_v3  ;;  %424 = vmatprep.subr.mxu0 %v211_v4  ;;  %v1601_v3 = vrot.slane %v369_v57, %v1595_v52  ;;  %v240_v57 = vld [vmem:[#allocation5 + $0x4b0] sm:$0xff] }
  0x60   :  { %v207_v8 = vld [vmem:[#allocation5 + $0x3a8] sm:$0xff]  ;;  %495 = vmatprep.subr.mxu1 %v339_v5  ;;  %v206_v10 = vld [vmem:[#allocation5 + $0x3a0] sm:$0xff]  ;;  %425 = vmatpush2.msra.mxu0 %v210_v6 }
  0x61   :  { %v335_v9 = vld [vmem:[#allocation5 + $0x7a8] sm:$0xff]  ;;  %v334_v11 = vld [vmem:[#allocation5 + $0x7a0] sm:$0xff]  ;;  %496 = vmatpush2.msra.mxu1 %v338_v7  ;;  %426 = vmatprep.subr.mxu0 %v207_v8  ;;  %v1605_v8 = vcombine.high %v1598_v62, %v1598_v62 }
  0x62   :  { %v203_v12 = vld [vmem:[#allocation5 + $0x388] sm:$0xff]  ;;  %497 = vmatprep.subr.mxu1 %v335_v9  ;;  %v202_v14 = vld [vmem:[#allocation5 + $0x380] sm:$0xff]  ;;  %427 = vmatpush2.msra.mxu0 %v206_v10 }
  0x63   :  { %v331_v13 = vld [vmem:[#allocation5 + $0x788] sm:$0xff]  ;;  %v330_v15 = vld [vmem:[#allocation5 + $0x780] sm:$0xff]  ;;  %498 = vmatpush2.msra.mxu1 %v334_v11  ;;  %428 = vmatprep.subr.mxu0 %v203_v12  ;;  %v1609_v11 = vcombine.high %v1601_v3, %v1601_v3  ;;  %v153_v12 = vld [vmem:[#allocation5 + $0x1f8] sm:$0xff] }
  0x64   :  { %v199_v16 = vld [vmem:[#allocation5 + $0x368] sm:$0xff]  ;;  %499 = vmatprep.subr.mxu1 %v331_v13  ;;  %v198_v18 = vld [vmem:[#allocation5 + $0x360] sm:$0xff]  ;;  %429 = vmatpush2.msra.mxu0 %v202_v14  ;;  %v281_v13 = vld [vmem:[#allocation5 + $0x5f8] sm:$0xff] }
  0x65   :  { %v327_v17 = vld [vmem:[#allocation5 + $0x768] sm:$0xff]  ;;  %v326_v19 = vld [vmem:[#allocation5 + $0x760] sm:$0xff]  ;;  %500 = vmatpush2.msra.mxu1 %v330_v15  ;;  %430 = vmatprep.subr.mxu0 %v199_v16  ;;  %v152_v14 = vld [vmem:[#allocation5 + $0x1f0] sm:$0xff] }
  0x66   :  { %v195_v20 = vld [vmem:[#allocation5 + $0x348] sm:$0xff]  ;;  %501 = vmatprep.subr.mxu1 %v327_v17  ;;  %v194_v22 = vld [vmem:[#allocation5 + $0x340] sm:$0xff]  ;;  %431 = vmatpush2.msra.mxu0 %v198_v18  ;;  %v280_v15 = vld [vmem:[#allocation5 + $0x5f0] sm:$0xff] }
  0x67   :  { %v323_v21 = vld [vmem:[#allocation5 + $0x748] sm:$0xff]  ;;  %v322_v23 = vld [vmem:[#allocation5 + $0x740] sm:$0xff]  ;;  %502 = vmatpush2.msra.mxu1 %v326_v19  ;;  %432 = vmatprep.subr.mxu0 %v195_v20  ;;  %v149_v16 = vld [vmem:[#allocation5 + $0x1d8] sm:$0xff] }
  0x68   :  { %v191_v24 = vld [vmem:[#allocation5 + $0x328] sm:$0xff]  ;;  %503 = vmatprep.subr.mxu1 %v323_v21  ;;  %v190_v26 = vld [vmem:[#allocation5 + $0x320] sm:$0xff]  ;;  %433 = vmatpush2.msra.mxu0 %v194_v22  ;;  %v277_v17 = vld [vmem:[#allocation5 + $0x5d8] sm:$0xff] }
  0x69   :  { %v319_v25 = vld [vmem:[#allocation5 + $0x728] sm:$0xff]  ;;  %v318_v27 = vld [vmem:[#allocation5 + $0x720] sm:$0xff]  ;;  %504 = vmatpush2.msra.mxu1 %v322_v23  ;;  %434 = vmatprep.subr.mxu0 %v191_v24  ;;  %v148_v18 = vld [vmem:[#allocation5 + $0x1d0] sm:$0xff] }
  0x6a   :  { %v187_v28 = vld [vmem:[#allocation5 + $0x308] sm:$0xff]  ;;  %505 = vmatprep.subr.mxu1 %v319_v25  ;;  %v186_v33 = vld [vmem:[#allocation5 + $0x300] sm:$0xff]  ;;  %435 = vmatpush2.msra.mxu0 %v190_v26  ;;  %v276_v19 = vld [vmem:[#allocation5 + $0x5d0] sm:$0xff] }
  0x6b   :  { %v315_v29 = vld [vmem:[#allocation5 + $0x708] sm:$0xff]  ;;  %v314_v34 = vld [vmem:[#allocation5 + $0x700] sm:$0xff]  ;;  %506 = vmatpush2.msra.mxu1 %v318_v27  ;;  %436 = vmatprep.subr.mxu0 %v187_v28  ;;  %v145_v20 = vld [vmem:[#allocation5 + $0x1b8] sm:$0xff] }
  0x6c   :  { %v183_v35 = vld [vmem:[#allocation5 + $0x2e8] sm:$0xff]  ;;  %507 = vmatprep.subr.mxu1 %v315_v29  ;;  %v182_v37 = vld [vmem:[#allocation5 + $0x2e0] sm:$0xff]  ;;  %437 = vmatpush2.msra.mxu0 %v186_v33  ;;  %v273_v21 = vld [vmem:[#allocation5 + $0x5b8] sm:$0xff] }
  0x6d   :  { %v311_v36 = vld [vmem:[#allocation5 + $0x6e8] sm:$0xff]  ;;  %v310_v38 = vld [vmem:[#allocation5 + $0x6e0] sm:$0xff]  ;;  %508 = vmatpush2.msra.mxu1 %v314_v34  ;;  %438 = vmatprep.subr.mxu0 %v183_v35  ;;  %v144_v22 = vld [vmem:[#allocation5 + $0x1b0] sm:$0xff] }
  0x6e   :  { %v179_v39 = vld [vmem:[#allocation5 + $0x2c8] sm:$0xff]  ;;  %509 = vmatprep.subr.mxu1 %v311_v36  ;;  %v178_v43 = vld [vmem:[#allocation5 + $0x2c0] sm:$0xff]  ;;  %439 = vmatpush2.msra.mxu0 %v182_v37  ;;  %v272_v23 = vld [vmem:[#allocation5 + $0x5b0] sm:$0xff] }
  0x6f   :  { %v307_v40 = vld [vmem:[#allocation5 + $0x6c8] sm:$0xff]  ;;  %v306_v44 = vld [vmem:[#allocation5 + $0x6c0] sm:$0xff]  ;;  %510 = vmatpush2.msra.mxu1 %v310_v38  ;;  %440 = vmatprep.subr.mxu0 %v179_v39  ;;  %v141_v24 = vld [vmem:[#allocation5 + $0x198] sm:$0xff] }
  0x70   :  { %v175_v45 = vld [vmem:[#allocation5 + $0x2a8] sm:$0xff]  ;;  %511 = vmatprep.subr.mxu1 %v307_v40  ;;  %v174_v47 = vld [vmem:[#allocation5 + $0x2a0] sm:$0xff]  ;;  %441 = vmatpush2.msra.mxu0 %v178_v43  ;;  %v269_v25 = vld [vmem:[#allocation5 + $0x598] sm:$0xff] }
  0x71   :  { %v303_v46 = vld [vmem:[#allocation5 + $0x6a8] sm:$0xff]  ;;  %v302_v48 = vld [vmem:[#allocation5 + $0x6a0] sm:$0xff]  ;;  %512 = vmatpush2.msra.mxu1 %v306_v44  ;;  %442 = vmatprep.subr.mxu0 %v175_v45  ;;  %v140_v26 = vld [vmem:[#allocation5 + $0x190] sm:$0xff] }
  0x72   :  { %v171_v50 = vld [vmem:[#allocation5 + $0x288] sm:$0xff]  ;;  %513 = vmatprep.subr.mxu1 %v303_v46  ;;  %v170_v53 = vld [vmem:[#allocation5 + $0x280] sm:$0xff]  ;;  %443 = vmatpush2.msra.mxu0 %v174_v47  ;;  %v268_v27 = vld [vmem:[#allocation5 + $0x590] sm:$0xff] }
  0x73   :  { %v299_v51 = vld [vmem:[#allocation5 + $0x688] sm:$0xff]  ;;  %v298_v54 = vld [vmem:[#allocation5 + $0x680] sm:$0xff]  ;;  %514 = vmatpush2.msra.mxu1 %v302_v48  ;;  %444 = vmatprep.subr.mxu0 %v171_v50  ;;  %v137_v28 = vld [vmem:[#allocation5 + $0x178] sm:$0xff] }
  0x74   :  { %v167_v55 = vld [vmem:[#allocation5 + $0x268] sm:$0xff]  ;;  %515 = vmatprep.subr.mxu1 %v299_v51  ;;  %v166_v58 = vld [vmem:[#allocation5 + $0x260] sm:$0xff]  ;;  %445 = vmatpush2.msra.mxu0 %v170_v53  ;;  %v265_v29 = vld [vmem:[#allocation5 + $0x578] sm:$0xff] }
  0x75   :  { %v295_v56 = vld [vmem:[#allocation5 + $0x668] sm:$0xff]  ;;  %v294_v59 = vld [vmem:[#allocation5 + $0x660] sm:$0xff]  ;;  %516 = vmatpush2.msra.mxu1 %v298_v54  ;;  %446 = vmatprep.subr.mxu0 %v167_v55  ;;  %v261_v33 = vld [vmem:[#allocation5 + $0x558] sm:$0xff] }
  0x76   :  { %v163_v60 = vld [vmem:[#allocation5 + $0x248] sm:$0xff]  ;;  %517 = vmatprep.subr.mxu1 %v295_v56  ;;  %v162_v63 = vld [vmem:[#allocation5 + $0x240] sm:$0xff]  ;;  %447 = vmatpush2.msra.mxu0 %v166_v58  ;;  %v132_v34 = vld [vmem:[#allocation5 + $0x150] sm:$0xff] }
  0x77   :  { %v291_v61 = vld [vmem:[#allocation5 + $0x648] sm:$0xff]  ;;  %v290_v0 = vld [vmem:[#allocation5 + $0x640] sm:$0xff]  ;;  %518 = vmatpush2.msra.mxu1 %v294_v59  ;;  %448 = vmatprep.subr.mxu0 %v163_v60  ;;  %v260_v35 = vld [vmem:[#allocation5 + $0x550] sm:$0xff] }
  0x78   :  { %v159_v1 = vld [vmem:[#allocation5 + $0x228] sm:$0xff]  ;;  %519 = vmatprep.subr.mxu1 %v291_v61  ;;  %v158_v4 = vld [vmem:[#allocation5 + $0x220] sm:$0xff]  ;;  %449 = vmatpush2.msra.mxu0 %v162_v63  ;;  %v129_v36 = vld [vmem:[#allocation5 + $0x138] sm:$0xff] }
  0x79   :  { %v287_v2 = vld [vmem:[#allocation5 + $0x628] sm:$0xff]  ;;  %v286_v5 = vld [vmem:[#allocation5 + $0x620] sm:$0xff]  ;;  %520 = vmatpush2.msra.mxu1 %v290_v0  ;;  %450 = vmatprep.subr.mxu0 %v159_v1  ;;  %v257_v37 = vld [vmem:[#allocation5 + $0x538] sm:$0xff] }
  0x7a   :  { %v155_v6 = vld [vmem:[#allocation5 + $0x208] sm:$0xff]  ;;  %521 = vmatprep.subr.mxu1 %v287_v2  ;;  %v154_v9 = vld [vmem:[#allocation5 + $0x200] sm:$0xff]  ;;  %451 = vmatpush2.msra.mxu0 %v158_v4  ;;  %v128_v38 = vld [vmem:[#allocation5 + $0x130] sm:$0xff] }
  0x7b   :  { %v283_v7 = vld [vmem:[#allocation5 + $0x608] sm:$0xff]  ;;  %522 = vmatpush2.msra.mxu1 %v286_v5  ;;  %v282_v10 = vld [vmem:[#allocation5 + $0x600] sm:$0xff]  ;;  %452 = vmatprep.subr.mxu0 %v155_v6  ;;  %v256_v39 = vld [vmem:[#allocation5 + $0x530] sm:$0xff] }
  0x7c   :  { %523 = vmatprep.subr.mxu1 %v283_v7  ;;  %453 = vmatpush2.msra.mxu0 %v154_v9  ;;  %v125_v40 = vld [vmem:[#allocation5 + $0x118] sm:$0xff]  ;;  %v124_v43 = vld [vmem:[#allocation5 + $0x110] sm:$0xff] }
  0x7d   :  { %454 = vmatprep.mubr.f32.mxu0 %v1605_v8  ;;  %524 = vmatpush2.msra.mxu1 %v282_v10  ;;  %v252_v44 = vld [vmem:[#allocation5 + $0x510] sm:$0xff]  ;;  %v121_v45 = vld [vmem:[#allocation5 + $0xf8] sm:$0xff] }
  0x7e   :  { %455 = vmatmul.mubr.f32.vlgmr.msra.gmra.mxu0 %v1598_v62  ;;  %525 = vmatprep.mubr.f32.mxu1 %v1609_v11  ;;  %v249_v46 = vld [vmem:[#allocation5 + $0x4f8] sm:$0xff]  ;;  %v120_v47 = vld [vmem:[#allocation5 + $0xf0] sm:$0xff] }
  0x7f   :  { %532 = vmatprep.subr.mxu0 %v153_v12  ;;  %603 = vmatprep.subr.mxu1 %v281_v13  ;;  %v248_v48 = vld [vmem:[#allocation5 + $0x4f0] sm:$0xff]  ;;  %v245_v50 = vld [vmem:[#allocation5 + $0x4d8] sm:$0xff] }
  0x80   :  { %526 = vmatmul.mubr.f32.vlgmr.msra.gmra.mxu1 %v1601_v3  ;;  %533 = vmatpush1.msra.mxu0 %v152_v14  ;;  %v116_v51 = vld [vmem:[#allocation5 + $0xd0] sm:$0xff]  ;;  %v113_v54 = vld [vmem:[#allocation5 + $0xb8] sm:$0xff] }
  0x81   :  { %604 = vmatpush1.msra.mxu1 %v280_v15  ;;  %534 = vmatprep.subr.mxu0 %v149_v16  ;;  %v244_v53 = vld [vmem:[#allocation5 + $0x4d0] sm:$0xff]  ;;  %v241_v55 = vld [vmem:[#allocation5 + $0x4b8] sm:$0xff] }
  0x82   :  { %605 = vmatprep.subr.mxu1 %v277_v17  ;;  %535 = vmatpush1.msra.mxu0 %v148_v18  ;;  %v112_v56 = vld [vmem:[#allocation5 + $0xb0] sm:$0xff]  ;;  %v109_v58 = vld [vmem:[#allocation5 + $0x98] sm:$0xff] }
  0x83   :  { %606 = vmatpush1.msra.mxu1 %v276_v19  ;;  %536 = vmatprep.subr.mxu0 %v145_v20  ;;  %v237_v59 = vld [vmem:[#allocation5 + $0x498] sm:$0xff]  ;;  %v108_v60 = vld [vmem:[#allocation5 + $0x90] sm:$0xff] }
  0x84   :  { %607 = vmatprep.subr.mxu1 %v273_v21  ;;  %537 = vmatpush1.msra.mxu0 %v144_v22  ;;  %v236_v61 = vld [vmem:[#allocation5 + $0x490] sm:$0xff]  ;;  %v105_v63 = vld [vmem:[#allocation5 + $0x78] sm:$0xff] }
  0x85   :  { %608 = vmatpush1.msra.mxu1 %v272_v23  ;;  %538 = vmatprep.subr.mxu0 %v141_v24  ;;  %v233_v0 = vld [vmem:[#allocation5 + $0x478] sm:$0xff]  ;;  %v104_v1 = vld [vmem:[#allocation5 + $0x70] sm:$0xff] }
  0x86   :  { %609 = vmatprep.subr.mxu1 %v269_v25  ;;  %539 = vmatpush1.msra.mxu0 %v140_v26  ;;  %v232_v2 = vld [vmem:[#allocation5 + $0x470] sm:$0xff]  ;;  %v101_v4 = vld [vmem:[#allocation5 + $0x58] sm:$0xff] }
  0x87   :  { %610 = vmatpush1.msra.mxu1 %v268_v27  ;;  %540 = vmatprep.subr.mxu0 %v137_v28  ;;  %v229_v5 = vld [vmem:[#allocation5 + $0x458] sm:$0xff]  ;;  %v100_v6 = vld [vmem:[#allocation5 + $0x50] sm:$0xff] }
  0x88   :  { %611 = vmatprep.subr.mxu1 %v265_v29  ;;  %541 = vmatpush1.msra.mxu0 %v136_v30  ;;  %v228_v7 = vld [vmem:[#allocation5 + $0x450] sm:$0xff]  ;;  %v97_v9 = vld [vmem:[#allocation5 + $0x38] sm:$0xff] }
  0x89   :  { %612 = vmatpush1.msra.mxu1 %v264_v31  ;;  %542 = vmatprep.subr.mxu0 %v133_v32  ;;  %v225_v10 = vld [vmem:[#allocation5 + $0x438] sm:$0xff]  ;;  %v96_v12 = vld [vmem:[#allocation5 + $0x30] sm:$0xff] }
  0x8a   :  { %613 = vmatprep.subr.mxu1 %v261_v33  ;;  %543 = vmatpush1.msra.mxu0 %v132_v34  ;;  %v224_v13 = vld [vmem:[#allocation5 + $0x430] sm:$0xff]  ;;  %v93_v14 = vld [vmem:[#allocation5 + $0x18] sm:$0xff] }
  0x8b   :  { %614 = vmatpush1.msra.mxu1 %v260_v35  ;;  %544 = vmatprep.subr.mxu0 %v129_v36  ;;  %v221_v15 = vld [vmem:[#allocation5 + $0x418] sm:$0xff]  ;;  %v92_v16 = vld [vmem:[#allocation5 + $0x10] sm:$0xff] }
  0x8c   :  { %615 = vmatprep.subr.mxu1 %v257_v37  ;;  %545 = vmatpush1.msra.mxu0 %v128_v38  ;;  %v220_v17 = vld [vmem:[#allocation5 + $0x410] sm:$0xff]  ;;  %v217_v18 = vld [vmem:[#allocation5 + $0x3f8] sm:$0xff] }
  0x8d   :  { %616 = vmatpush1.msra.mxu1 %v256_v39  ;;  %546 = vmatprep.subr.mxu0 %v125_v40  ;;  %v345_v19 = vld [vmem:[#allocation5 + $0x7f8] sm:$0xff]  ;;  %v216_v20 = vld [vmem:[#allocation5 + $0x3f0] sm:$0xff] }
  0x8e   :  { %617 = vmatprep.subr.mxu1 %v253_v42  ;;  %547 = vmatpush1.msra.mxu0 %v124_v43  ;;  %v344_v21 = vld [vmem:[#allocation5 + $0x7f0] sm:$0xff]  ;;  %v213_v22 = vld [vmem:[#allocation5 + $0x3d8] sm:$0xff] }
  0x8f   :  { %618 = vmatpush1.msra.mxu1 %v252_v44  ;;  %548 = vmatprep.subr.mxu0 %v121_v45  ;;  %v341_v23 = vld [vmem:[#allocation5 + $0x7d8] sm:$0xff]  ;;  %v212_v24 = vld [vmem:[#allocation5 + $0x3d0] sm:$0xff] }
  0x90   :  { %619 = vmatprep.subr.mxu1 %v249_v46  ;;  %549 = vmatpush1.msra.mxu0 %v120_v47  ;;  %v340_v25 = vld [vmem:[#allocation5 + $0x7d0] sm:$0xff]  ;;  %v209_v26 = vld [vmem:[#allocation5 + $0x3b8] sm:$0xff] }
  0x91   :  { %620 = vmatpush1.msra.mxu1 %v248_v48  ;;  %550 = vmatprep.subr.mxu0 %v117_v49  ;;  %v337_v27 = vld [vmem:[#allocation5 + $0x7b8] sm:$0xff]  ;;  %v208_v28 = vld [vmem:[#allocation5 + $0x3b0] sm:$0xff] }
  0x92   :  { %621 = vmatprep.subr.mxu1 %v245_v50  ;;  %551 = vmatpush1.msra.mxu0 %v116_v51  ;;  %v336_v29 = vld [vmem:[#allocation5 + $0x7b0] sm:$0xff]  ;;  %v205_v30 = vld [vmem:[#allocation5 + $0x398] sm:$0xff] }
  0x93   :  { %622 = vmatpush1.msra.mxu1 %v244_v53  ;;  %552 = vmatprep.subr.mxu0 %v113_v54  ;;  %v333_v31 = vld [vmem:[#allocation5 + $0x798] sm:$0xff]  ;;  %v204_v32 = vld [vmem:[#allocation5 + $0x390] sm:$0xff] }
  0x94   :  { %623 = vmatprep.subr.mxu1 %v241_v55  ;;  %553 = vmatpush1.msra.mxu0 %v112_v56  ;;  %v332_v33 = vld [vmem:[#allocation5 + $0x790] sm:$0xff]  ;;  %v201_v34 = vld [vmem:[#allocation5 + $0x378] sm:$0xff] }
  0x95   :  { %624 = vmatpush1.msra.mxu1 %v240_v57  ;;  %554 = vmatprep.subr.mxu0 %v109_v58  ;;  %v329_v35 = vld [vmem:[#allocation5 + $0x778] sm:$0xff]  ;;  %v200_v36 = vld [vmem:[#allocation5 + $0x370] sm:$0xff] }
  0x96   :  { %625 = vmatprep.subr.mxu1 %v237_v59  ;;  %555 = vmatpush1.msra.mxu0 %v108_v60  ;;  %v328_v37 = vld [vmem:[#allocation5 + $0x770] sm:$0xff]  ;;  %v197_v38 = vld [vmem:[#allocation5 + $0x358] sm:$0xff] }
  0x97   :  { %626 = vmatpush1.msra.mxu1 %v236_v61  ;;  %556 = vmatprep.subr.mxu0 %v105_v63  ;;  %v325_v39 = vld [vmem:[#allocation5 + $0x758] sm:$0xff]  ;;  %v196_v40 = vld [vmem:[#allocation5 + $0x350] sm:$0xff] }
  0x98   :  { %627 = vmatprep.subr.mxu1 %v233_v0  ;;  %557 = vmatpush1.msra.mxu0 %v104_v1  ;;  %v324_v42 = vld [vmem:[#allocation5 + $0x750] sm:$0xff]  ;;  %v193_v43 = vld [vmem:[#allocation5 + $0x338] sm:$0xff] }
  0x99   :  { %628 = vmatpush1.msra.mxu1 %v232_v2  ;;  %558 = vmatprep.subr.mxu0 %v101_v4  ;;  %v321_v44 = vld [vmem:[#allocation5 + $0x738] sm:$0xff]  ;;  %v192_v45 = vld [vmem:[#allocation5 + $0x330] sm:$0xff] }
  0x9a   :  { %629 = vmatprep.subr.mxu1 %v229_v5  ;;  %559 = vmatpush1.msra.mxu0 %v100_v6  ;;  %v320_v46 = vld [vmem:[#allocation5 + $0x730] sm:$0xff]  ;;  %v189_v47 = vld [vmem:[#allocation5 + $0x318] sm:$0xff] }
  0x9b   :  { %630 = vmatpush1.msra.mxu1 %v228_v7  ;;  %560 = vmatprep.subr.mxu0 %v97_v9  ;;  %v317_v48 = vld [vmem:[#allocation5 + $0x718] sm:$0xff]  ;;  %v188_v49 = vld [vmem:[#allocation5 + $0x310] sm:$0xff] }
  0x9c   :  { %631 = vmatprep.subr.mxu1 %v225_v10  ;;  %561 = vmatpush1.msra.mxu0 %v96_v12  ;;  %v316_v50 = vld [vmem:[#allocation5 + $0x710] sm:$0xff]  ;;  %v185_v51 = vld [vmem:[#allocation5 + $0x2f8] sm:$0xff] }
  0x9d   :  { %632 = vmatpush1.msra.mxu1 %v224_v13  ;;  %562 = vmatprep.subr.mxu0 %v93_v14  ;;  %v313_v53 = vld [vmem:[#allocation5 + $0x6f8] sm:$0xff]  ;;  %v184_v54 = vld [vmem:[#allocation5 + $0x2f0] sm:$0xff] }
  0x9e   :  { %633 = vmatprep.subr.mxu1 %v221_v15  ;;  %563 = vmatpush1.msra.mxu0 %v92_v16  ;;  %v312_v55 = vld [vmem:[#allocation5 + $0x6f0] sm:$0xff]  ;;  %v181_v56 = vld [vmem:[#allocation5 + $0x2d8] sm:$0xff] }
  0x9f   :  { %634 = vmatpush1.msra.mxu1 %v220_v17  ;;  %564 = vmatprep.subr.mxu0 %v217_v18  ;;  %v309_v57 = vld [vmem:[#allocation5 + $0x6d8] sm:$0xff]  ;;  %v180_v58 = vld [vmem:[#allocation5 + $0x2d0] sm:$0xff] }
  0xa0   :  { %635 = vmatprep.subr.mxu1 %v345_v19  ;;  %565 = vmatpush2.msra.mxu0 %v216_v20  ;;  %v308_v59 = vld [vmem:[#allocation5 + $0x6d0] sm:$0xff]  ;;  %v177_v60 = vld [vmem:[#allocation5 + $0x2b8] sm:$0xff] }
  0xa1   :  { %636 = vmatpush2.msra.mxu1 %v344_v21  ;;  %566 = vmatprep.subr.mxu0 %v213_v22  ;;  %v305_v61 = vld [vmem:[#allocation5 + $0x6b8] sm:$0xff]  ;;  %v176_v63 = vld [vmem:[#allocation5 + $0x2b0] sm:$0xff] }
  0xa2   :  { %637 = vmatprep.subr.mxu1 %v341_v23  ;;  %567 = vmatpush2.msra.mxu0 %v212_v24  ;;  %v304_v0 = vld [vmem:[#allocation5 + $0x6b0] sm:$0xff]  ;;  %v173_v1 = vld [vmem:[#allocation5 + $0x298] sm:$0xff]  ;;  %v769_v24 = vld [vmem:[#allocation7 + $0x1e8] sm:$0xff] }
  0xa3   :  { %638 = vmatpush2.msra.mxu1 %v340_v25  ;;  %568 = vmatprep.subr.mxu0 %v209_v26  ;;  %v301_v2 = vld [vmem:[#allocation5 + $0x698] sm:$0xff]  ;;  %v172_v4 = vld [vmem:[#allocation5 + $0x290] sm:$0xff]  ;;  %v768_v25 = vld [vmem:[#allocation7 + $0x1e0] sm:$0xff] }
  0xa4   :  { %639 = vmatprep.subr.mxu1 %v337_v27  ;;  %569 = vmatpush2.msra.mxu0 %v208_v28  ;;  %v300_v5 = vld [vmem:[#allocation5 + $0x690] sm:$0xff]  ;;  %v169_v6 = vld [vmem:[#allocation5 + $0x278] sm:$0xff]  ;;  %v765_v26 = vld [vmem:[#allocation7 + $0x1c8] sm:$0xff] }
  0xa5   :  { %640 = vmatpush2.msra.mxu1 %v336_v29  ;;  %570 = vmatprep.subr.mxu0 %v205_v30  ;;  %v297_v7 = vld [vmem:[#allocation5 + $0x678] sm:$0xff]  ;;  %v168_v9 = vld [vmem:[#allocation5 + $0x270] sm:$0xff]  ;;  %v764_v27 = vld [vmem:[#allocation7 + $0x1c0] sm:$0xff] }
  0xa6   :  { %641 = vmatprep.subr.mxu1 %v333_v31  ;;  %571 = vmatpush2.msra.mxu0 %v204_v32  ;;  %v296_v10 = vld [vmem:[#allocation5 + $0x670] sm:$0xff]  ;;  %v165_v12 = vld [vmem:[#allocation5 + $0x258] sm:$0xff]  ;;  %v761_v28 = vld [vmem:[#allocation7 + $0x1a8] sm:$0xff] }
  0xa7   :  { %642 = vmatpush2.msra.mxu1 %v332_v33  ;;  %572 = vmatprep.subr.mxu0 %v201_v34  ;;  %v293_v13 = vld [vmem:[#allocation5 + $0x658] sm:$0xff]  ;;  %v164_v14 = vld [vmem:[#allocation5 + $0x250] sm:$0xff]  ;;  %v760_v29 = vld [vmem:[#allocation7 + $0x1a0] sm:$0xff] }
  0xa8   :  { %643 = vmatprep.subr.mxu1 %v329_v35  ;;  %573 = vmatpush2.msra.mxu0 %v200_v36  ;;  %v292_v15 = vld [vmem:[#allocation5 + $0x650] sm:$0xff]  ;;  %v161_v16 = vld [vmem:[#allocation5 + $0x238] sm:$0xff]  ;;  %v757_v30 = vld [vmem:[#allocation7 + $0x188] sm:$0xff] }
  0xa9   :  { %644 = vmatpush2.msra.mxu1 %v328_v37  ;;  %574 = vmatprep.subr.mxu0 %v197_v38  ;;  %v289_v17 = vld [vmem:[#allocation5 + $0x638] sm:$0xff]  ;;  %v160_v18 = vld [vmem:[#allocation5 + $0x230] sm:$0xff]  ;;  %v753_v31 = vld [vmem:[#allocation7 + $0x168] sm:$0xff] }
  0xaa   :  { %645 = vmatprep.subr.mxu1 %v325_v39  ;;  %575 = vmatpush2.msra.mxu0 %v196_v40  ;;  %v288_v19 = vld [vmem:[#allocation5 + $0x630] sm:$0xff]  ;;  %v157_v20 = vld [vmem:[#allocation5 + $0x218] sm:$0xff]  ;;  %v897_v32 = vld [vmem:[#allocation7 + $0x5e8] sm:$0xff] }
  0xab   :  { %646 = vmatpush2.msra.mxu1 %v324_v42  ;;  %576 = vmatprep.subr.mxu0 %v193_v43  ;;  %v285_v21 = vld [vmem:[#allocation5 + $0x618] sm:$0xff]  ;;  %v156_v22 = vld [vmem:[#allocation5 + $0x210] sm:$0xff]  ;;  %v748_v33 = vld [vmem:[#allocation7 + $0x140] sm:$0xff] }
  0xac   :  { %647 = vmatprep.subr.mxu1 %v321_v44  ;;  %577 = vmatpush2.msra.mxu0 %v192_v45  ;;  %v284_v23 = vld [vmem:[#allocation5 + $0x610] sm:$0xff]  ;;  %v893_v34 = vld [vmem:[#allocation7 + $0x5c8] sm:$0xff]  ;;  %v892_v36 = vld [vmem:[#allocation7 + $0x5c0] sm:$0xff] }
  0xad   :  { %648 = vmatpush2.msra.mxu1 %v320_v46  ;;  %578 = vmatprep.subr.mxu0 %v189_v47  ;;  %v745_v35 = vld [vmem:[#allocation7 + $0x128] sm:$0xff]  ;;  %v744_v37 = vld [vmem:[#allocation7 + $0x120] sm:$0xff] }
  0xae   :  { %649 = vmatprep.subr.mxu1 %v317_v48  ;;  %579 = vmatpush2.msra.mxu0 %v188_v49  ;;  %v889_v38 = vld [vmem:[#allocation7 + $0x5a8] sm:$0xff]  ;;  %v888_v40 = vld [vmem:[#allocation7 + $0x5a0] sm:$0xff] }
  0xaf   :  { %650 = vmatpush2.msra.mxu1 %v316_v50  ;;  %580 = vmatprep.subr.mxu0 %v185_v51  ;;  %v741_v39 = vld [vmem:[#allocation7 + $0x108] sm:$0xff]  ;;  %v740_v42 = vld [vmem:[#allocation7 + $0x100] sm:$0xff] }
  0xb0   :  { %651 = vmatprep.subr.mxu1 %v313_v53  ;;  %581 = vmatpush2.msra.mxu0 %v184_v54  ;;  %v885_v43 = vld [vmem:[#allocation7 + $0x588] sm:$0xff]  ;;  %v884_v45 = vld [vmem:[#allocation7 + $0x580] sm:$0xff] }
  0xb1   :  { %652 = vmatpush2.msra.mxu1 %v312_v55  ;;  %582 = vmatprep.subr.mxu0 %v181_v56  ;;  %v737_v44 = vld [vmem:[#allocation7 + $0xe8] sm:$0xff]  ;;  %v736_v46 = vld [vmem:[#allocation7 + $0xe0] sm:$0xff] }
  0xb2   :  { %653 = vmatprep.subr.mxu1 %v309_v57  ;;  %583 = vmatpush2.msra.mxu0 %v180_v58  ;;  %v881_v47 = vld [vmem:[#allocation7 + $0x568] sm:$0xff]  ;;  %v880_v49 = vld [vmem:[#allocation7 + $0x560] sm:$0xff] }
  0xb3   :  { %654 = vmatpush2.msra.mxu1 %v308_v59  ;;  %584 = vmatprep.subr.mxu0 %v177_v60  ;;  %v733_v48 = vld [vmem:[#allocation7 + $0xc8] sm:$0xff]  ;;  %v732_v50 = vld [vmem:[#allocation7 + $0xc0] sm:$0xff] }
  0xb4   :  { %655 = vmatprep.subr.mxu1 %v305_v61  ;;  %585 = vmatpush2.msra.mxu0 %v176_v63  ;;  %v877_v51 = vld [vmem:[#allocation7 + $0x548] sm:$0xff]  ;;  %v876_v54 = vld [vmem:[#allocation7 + $0x540] sm:$0xff] }
  0xb5   :  { %656 = vmatpush2.msra.mxu1 %v304_v0  ;;  %586 = vmatprep.subr.mxu0 %v173_v1  ;;  %v729_v53 = vld [vmem:[#allocation7 + $0xa8] sm:$0xff]  ;;  %v728_v55 = vld [vmem:[#allocation7 + $0xa0] sm:$0xff] }
  0xb6   :  { %657 = vmatprep.subr.mxu1 %v301_v2  ;;  %587 = vmatpush2.msra.mxu0 %v172_v4  ;;  %v873_v56 = vld [vmem:[#allocation7 + $0x528] sm:$0xff]  ;;  %v872_v58 = vld [vmem:[#allocation7 + $0x520] sm:$0xff] }
  0xb7   :  { %658 = vmatpush2.msra.mxu1 %v300_v5  ;;  %588 = vmatprep.subr.mxu0 %v169_v6  ;;  %v725_v57 = vld [vmem:[#allocation7 + $0x88] sm:$0xff]  ;;  %v724_v59 = vld [vmem:[#allocation7 + $0x80] sm:$0xff] }
  0xb8   :  { %659 = vmatprep.subr.mxu1 %v297_v7  ;;  %589 = vmatpush2.msra.mxu0 %v168_v9  ;;  %v869_v60 = vld [vmem:[#allocation7 + $0x508] sm:$0xff]  ;;  %v868_v63 = vld [vmem:[#allocation7 + $0x500] sm:$0xff] }
  0xb9   :  { %660 = vmatpush2.msra.mxu1 %v296_v10  ;;  %590 = vmatprep.subr.mxu0 %v165_v12  ;;  %v721_v61 = vld [vmem:[#allocation7 + $0x68] sm:$0xff]  ;;  %v720_v0 = vld [vmem:[#allocation7 + $0x60] sm:$0xff] }
  0xba   :  { %661 = vmatprep.subr.mxu1 %v293_v13  ;;  %591 = vmatpush2.msra.mxu0 %v164_v14  ;;  %v865_v1 = vld [vmem:[#allocation7 + $0x4e8] sm:$0xff]  ;;  %v864_v4 = vld [vmem:[#allocation7 + $0x4e0] sm:$0xff] }
  0xbb   :  { %662 = vmatpush2.msra.mxu1 %v292_v15  ;;  %592 = vmatprep.subr.mxu0 %v161_v16  ;;  %v717_v2 = vld [vmem:[#allocation7 + $0x48] sm:$0xff]  ;;  %v716_v5 = vld [vmem:[#allocation7 + $0x40] sm:$0xff] }
  0xbc   :  { %663 = vmatprep.subr.mxu1 %v289_v17  ;;  %593 = vmatpush2.msra.mxu0 %v160_v18  ;;  %v861_v6 = vld [vmem:[#allocation7 + $0x4c8] sm:$0xff]  ;;  %v860_v9 = vld [vmem:[#allocation7 + $0x4c0] sm:$0xff] }
  0xbd   :  { %664 = vmatpush2.msra.mxu1 %v288_v19  ;;  %594 = vmatprep.subr.mxu0 %v157_v20  ;;  %v713_v7 = vld [vmem:[#allocation7 + $0x28] sm:$0xff]  ;;  %v712_v10 = vld [vmem:[#allocation7 + $0x20] sm:$0xff] }
  0xbe   :  { %665 = vmatprep.subr.mxu1 %v285_v21  ;;  %595 = vmatpush2.msra.mxu0 %v156_v22  ;;  %v857_v12 = vld [vmem:[#allocation7 + $0x4a8] sm:$0xff]  ;;  %v856_v14 = vld [vmem:[#allocation7 + $0x4a0] sm:$0xff] }
  0xbf   :  { %596 = vmatprep.mubr.f32.mxu0 %v1605_v8  ;;  %666 = vmatpush2.msra.mxu1 %v284_v23  ;;  %v756_v8 = vld [vmem:[#allocation7 + $0x180] sm:$0xff]  ;;  %v709_v13 = vld [vmem:[#allocation7 + $0x8] sm:$0xff] }
  0xc0   :  { %667 = vmatprep.mubr.f32.mxu1 %v1609_v11  ;;  %597 = vmatmul.mubr.f32.vlgmr.msra.gmra.mxu0 %v1598_v62  ;;  %v752_v11 = vld [vmem:[#allocation7 + $0x160] sm:$0xff]  ;;  %v749_v62 = vld [vmem:[#allocation7 + $0x148] sm:$0xff] }
  0xc1   :  { %668 = vmatmul.mubr.f32.vlgmr.msra.gmra.mxu1 %v1601_v3  ;;  %986 = vmatprep.subr.mxu0 %v769_v24  ;;  %v896_v3 = vld [vmem:[#allocation7 + $0x5e0] sm:$0xff]  ;;  %v853_v16 = vld [vmem:[#allocation7 + $0x488] sm:$0xff] }
  0xc2   :  { %987 = vmatpush1.msra.mxu0 %v768_v25  ;;  %1057 = vmatprep.subr.mxu1 %v897_v32  ;;  %v708_v15 = vld [vmem:[#allocation7] sm:$0xff]  ;;  %v833_v17 = vld [vmem:[#allocation7 + $0x3e8] sm:$0xff] }
  0xc3   :  { %988 = vmatprep.subr.mxu0 %v765_v26  ;;  %1058 = vmatpush1.msra.mxu1 %v896_v3  ;;  %v852_v18 = vld [vmem:[#allocation7 + $0x480] sm:$0xff]  ;;  %v849_v20 = vld [vmem:[#allocation7 + $0x468] sm:$0xff] }
  0xc4   :  { %989 = vmatpush1.msra.mxu0 %v764_v27  ;;  %1059 = vmatprep.subr.mxu1 %v893_v34  ;;  %v832_v19 = vld [vmem:[#allocation7 + $0x3e0] sm:$0xff]  ;;  %v829_v21 = vld [vmem:[#allocation7 + $0x3c8] sm:$0xff] }
  0xc5   :  { %990 = vmatprep.subr.mxu0 %v761_v28  ;;  %1060 = vmatpush1.msra.mxu1 %v892_v36  ;;  %v848_v22 = vld [vmem:[#allocation7 + $0x460] sm:$0xff]  ;;  %v845_v24 = vld [vmem:[#allocation7 + $0x448] sm:$0xff] }
  0xc6   :  { %991 = vmatpush1.msra.mxu0 %v760_v29  ;;  %1061 = vmatprep.subr.mxu1 %v889_v38  ;;  %v828_v23 = vld [vmem:[#allocation7 + $0x3c0] sm:$0xff]  ;;  %v825_v25 = vld [vmem:[#allocation7 + $0x3a8] sm:$0xff] }
  0xc7   :  { %992 = vmatprep.subr.mxu0 %v757_v30  ;;  %1062 = vmatpush1.msra.mxu1 %v888_v40  ;;  %v844_v26 = vld [vmem:[#allocation7 + $0x440] sm:$0xff]  ;;  %v841_v28 = vld [vmem:[#allocation7 + $0x428] sm:$0xff] }
  0xc8   :  { %993 = vmatpush1.msra.mxu0 %v756_v8  ;;  %1063 = vmatprep.subr.mxu1 %v885_v43  ;;  %v824_v27 = vld [vmem:[#allocation7 + $0x3a0] sm:$0xff]  ;;  %v821_v29 = vld [vmem:[#allocation7 + $0x388] sm:$0xff] }
  0xc9   :  { %994 = vmatprep.subr.mxu0 %v753_v31  ;;  %1064 = vmatpush1.msra.mxu1 %v884_v45  ;;  %v840_v30 = vld [vmem:[#allocation7 + $0x420] sm:$0xff]  ;;  %v837_v31 = vld [vmem:[#allocation7 + $0x408] sm:$0xff] }
  0xca   :  { %995 = vmatpush1.msra.mxu0 %v752_v11  ;;  %1065 = vmatprep.subr.mxu1 %v881_v47  ;;  %v820_v8 = vld [vmem:[#allocation7 + $0x380] sm:$0xff]  ;;  %v817_v11 = vld [vmem:[#allocation7 + $0x368] sm:$0xff] }
  0xcb   :  { %996 = vmatprep.subr.mxu0 %v749_v62  ;;  %1066 = vmatpush1.msra.mxu1 %v880_v49  ;;  %v836_v32 = vld [vmem:[#allocation7 + $0x400] sm:$0xff]  ;;  %v961_v3 = vld [vmem:[#allocation7 + $0x7e8] sm:$0xff] }
  0xcc   :  { %997 = vmatpush1.msra.mxu0 %v748_v33  ;;  %1067 = vmatprep.subr.mxu1 %v877_v51  ;;  %v816_v62 = vld [vmem:[#allocation7 + $0x360] sm:$0xff]  ;;  %v813_v33 = vld [vmem:[#allocation7 + $0x348] sm:$0xff] }
  0xcd   :  { %998 = vmatprep.subr.mxu0 %v745_v35  ;;  %1068 = vmatpush1.msra.mxu1 %v876_v54  ;;  %v960_v34 = vld [vmem:[#allocation7 + $0x7e0] sm:$0xff]  ;;  %v957_v36 = vld [vmem:[#allocation7 + $0x7c8] sm:$0xff] }
  0xce   :  { %999 = vmatpush1.msra.mxu0 %v744_v37  ;;  %1069 = vmatprep.subr.mxu1 %v873_v56  ;;  %v812_v35 = vld [vmem:[#allocation7 + $0x340] sm:$0xff]  ;;  %v809_v37 = vld [vmem:[#allocation7 + $0x328] sm:$0xff] }
  0xcf   :  { %1000 = vmatprep.subr.mxu0 %v741_v39  ;;  %1070 = vmatpush1.msra.mxu1 %v872_v58  ;;  %v956_v38 = vld [vmem:[#allocation7 + $0x7c0] sm:$0xff]  ;;  %v953_v40 = vld [vmem:[#allocation7 + $0x7a8] sm:$0xff] }
  0xd0   :  { %1001 = vmatpush1.msra.mxu0 %v740_v42  ;;  %1071 = vmatprep.subr.mxu1 %v869_v60  ;;  %v808_v39 = vld [vmem:[#allocation7 + $0x320] sm:$0xff]  ;;  %v805_v42 = vld [vmem:[#allocation7 + $0x308] sm:$0xff] }
  0xd1   :  { %1002 = vmatprep.subr.mxu0 %v737_v44  ;;  %1072 = vmatpush1.msra.mxu1 %v868_v63  ;;  %v952_v43 = vld [vmem:[#allocation7 + $0x7a0] sm:$0xff]  ;;  %v949_v45 = vld [vmem:[#allocation7 + $0x788] sm:$0xff] }
  0xd2   :  { %1003 = vmatpush1.msra.mxu0 %v736_v46  ;;  %1073 = vmatprep.subr.mxu1 %v865_v1  ;;  %v804_v44 = vld [vmem:[#allocation7 + $0x300] sm:$0xff]  ;;  %v801_v46 = vld [vmem:[#allocation7 + $0x2e8] sm:$0xff] }
  0xd3   :  { %1004 = vmatprep.subr.mxu0 %v733_v48  ;;  %1074 = vmatpush1.msra.mxu1 %v864_v4  ;;  %v948_v47 = vld [vmem:[#allocation7 + $0x780] sm:$0xff]  ;;  %v945_v49 = vld [vmem:[#allocation7 + $0x768] sm:$0xff] }
  0xd4   :  { %1005 = vmatpush1.msra.mxu0 %v732_v50  ;;  %1075 = vmatprep.subr.mxu1 %v861_v6  ;;  %v800_v48 = vld [vmem:[#allocation7 + $0x2e0] sm:$0xff]  ;;  %v797_v50 = vld [vmem:[#allocation7 + $0x2c8] sm:$0xff] }
  0xd5   :  { %1006 = vmatprep.subr.mxu0 %v729_v53  ;;  %1076 = vmatpush1.msra.mxu1 %v860_v9  ;;  %v944_v51 = vld [vmem:[#allocation7 + $0x760] sm:$0xff]  ;;  %v941_v54 = vld [vmem:[#allocation7 + $0x748] sm:$0xff] }
  0xd6   :  { %1007 = vmatpush1.msra.mxu0 %v728_v55  ;;  %1077 = vmatprep.subr.mxu1 %v857_v12  ;;  %v796_v53 = vld [vmem:[#allocation7 + $0x2c0] sm:$0xff]  ;;  %v793_v55 = vld [vmem:[#allocation7 + $0x2a8] sm:$0xff] }
  0xd7   :  { %1008 = vmatprep.subr.mxu0 %v725_v57  ;;  %1078 = vmatpush1.msra.mxu1 %v856_v14  ;;  %v940_v56 = vld [vmem:[#allocation7 + $0x740] sm:$0xff]  ;;  %v937_v58 = vld [vmem:[#allocation7 + $0x728] sm:$0xff] }
  0xd8   :  { %1009 = vmatpush1.msra.mxu0 %v724_v59  ;;  %1079 = vmatprep.subr.mxu1 %v853_v16  ;;  %v792_v57 = vld [vmem:[#allocation7 + $0x2a0] sm:$0xff]  ;;  %v789_v59 = vld [vmem:[#allocation7 + $0x288] sm:$0xff] }
  0xd9   :  { %1010 = vmatprep.subr.mxu0 %v721_v61  ;;  %1080 = vmatpush1.msra.mxu1 %v852_v18  ;;  %v936_v60 = vld [vmem:[#allocation7 + $0x720] sm:$0xff]  ;;  %v933_v63 = vld [vmem:[#allocation7 + $0x708] sm:$0xff]  ;;  %v771_v18 = vld [vmem:[#allocation7 + $0x1f8] sm:$0xff] }
  0xda   :  { %1011 = vmatpush1.msra.mxu0 %v720_v0  ;;  %1081 = vmatprep.subr.mxu1 %v849_v20  ;;  %v788_v61 = vld [vmem:[#allocation7 + $0x280] sm:$0xff]  ;;  %v785_v0 = vld [vmem:[#allocation7 + $0x268] sm:$0xff] }
  0xdb   :  { %1012 = vmatprep.subr.mxu0 %v717_v2  ;;  %1082 = vmatpush1.msra.mxu1 %v848_v22  ;;  %v932_v1 = vld [vmem:[#allocation7 + $0x700] sm:$0xff]  ;;  %v929_v4 = vld [vmem:[#allocation7 + $0x6e8] sm:$0xff] }
  0xdc   :  { %1013 = vmatpush1.msra.mxu0 %v716_v5  ;;  %1083 = vmatprep.subr.mxu1 %v845_v24  ;;  %v784_v2 = vld [vmem:[#allocation7 + $0x260] sm:$0xff]  ;;  %v781_v5 = vld [vmem:[#allocation7 + $0x248] sm:$0xff] }
  0xdd   :  { %1014 = vmatprep.subr.mxu0 %v713_v7  ;;  %1084 = vmatpush1.msra.mxu1 %v844_v26  ;;  %v928_v6 = vld [vmem:[#allocation7 + $0x6e0] sm:$0xff]  ;;  %v925_v9 = vld [vmem:[#allocation7 + $0x6c8] sm:$0xff] }
  0xde   :  { %1015 = vmatpush1.msra.mxu0 %v712_v10  ;;  %1085 = vmatprep.subr.mxu1 %v841_v28  ;;  %v780_v7 = vld [vmem:[#allocation7 + $0x240] sm:$0xff]  ;;  %v777_v10 = vld [vmem:[#allocation7 + $0x228] sm:$0xff] }
  0xdf   :  { %1016 = vmatprep.subr.mxu0 %v709_v13  ;;  %1086 = vmatpush1.msra.mxu1 %v840_v30  ;;  %v924_v12 = vld [vmem:[#allocation7 + $0x6c0] sm:$0xff]  ;;  %v921_v14 = vld [vmem:[#allocation7 + $0x6a8] sm:$0xff]  ;;  %v1620_v30 = vsub.s32 0, %v1592_v41 }
  0xe0   :  { %1017 = vmatpush1.msra.mxu0 %v708_v15  ;;  %1087 = vmatprep.subr.mxu1 %v837_v31  ;;  %v776_v13 = vld [vmem:[#allocation7 + $0x220] sm:$0xff]  ;;  %v773_v15 = vld [vmem:[#allocation7 + $0x208] sm:$0xff]  ;;  %v1628_v31 = vsub.s32 1, %v1592_v41 }
  0xe1   :  { %1018 = vmatprep.subr.mxu0 %v833_v17  ;;  %1088 = vmatpush1.msra.mxu1 %v836_v32  ;;  %v920_v16 = vld [vmem:[#allocation7 + $0x6a0] sm:$0xff] }
  0xe2   :  { %1019 = vmatpush2.msra.mxu0 %v832_v19  ;;  %1089 = vmatprep.subr.mxu1 %v961_v3  ;;  %v772_v17 = vld [vmem:[#allocation7 + $0x200] sm:$0xff]  ;;  %v917_v19 = vld [vmem:[#allocation7 + $0x688] sm:$0xff] }
  0xe3   :  { %1020 = vmatprep.subr.mxu0 %v829_v21  ;;  %1090 = vmatpush2.msra.mxu1 %v960_v34  ;;  %v916_v20 = vld [vmem:[#allocation7 + $0x680] sm:$0xff]  ;;  %v913_v21 = vld [vmem:[#allocation7 + $0x668] sm:$0xff] }
  0xe4   :  { %1021 = vmatpush2.msra.mxu0 %v828_v23  ;;  %1091 = vmatprep.subr.mxu1 %v957_v36  ;;  %v912_v22 = vld [vmem:[#allocation7 + $0x660] sm:$0xff]  ;;  %v909_v23 = vld [vmem:[#allocation7 + $0x648] sm:$0xff] }
  0xe5   :  { %1022 = vmatprep.subr.mxu0 %v825_v25  ;;  %1092 = vmatpush2.msra.mxu1 %v956_v38  ;;  %v908_v24 = vld [vmem:[#allocation7 + $0x640] sm:$0xff]  ;;  %v905_v25 = vld [vmem:[#allocation7 + $0x628] sm:$0xff] }
  0xe6   :  { %1023 = vmatpush2.msra.mxu0 %v824_v27  ;;  %1093 = vmatprep.subr.mxu1 %v953_v40  ;;  %v904_v26 = vld [vmem:[#allocation7 + $0x620] sm:$0xff]  ;;  %v901_v27 = vld [vmem:[#allocation7 + $0x608] sm:$0xff] }
  0xe7   :  { %1024 = vmatprep.subr.mxu0 %v821_v29  ;;  %1094 = vmatpush2.msra.mxu1 %v952_v43  ;;  %v900_v28 = vld [vmem:[#allocation7 + $0x600] sm:$0xff]  ;;  %v899_v29 = vld [vmem:[#allocation7 + $0x5f8] sm:$0xff] }
  0xe8   :  { %1025 = vmatpush2.msra.mxu0 %v820_v8  ;;  %1095 = vmatprep.subr.mxu1 %v949_v45  ;;  %v1625_v8 = vld [vmem:[%s1685_s3] sm:$0xf]  ;;  %v1632_v32 = vld [vmem:[#allocation8] sm:$0xf] }
  0xe9   :  { %1026 = vmatprep.subr.mxu0 %v817_v11  ;;  %1096 = vmatpush2.msra.mxu1 %v948_v47  ;;  %v351_v11 = vrot.slane %v1625_v8, %v1620_v30 }
  0xea   :  { %1027 = vmatpush2.msra.mxu0 %v816_v62  ;;  %1097 = vmatprep.subr.mxu1 %v945_v49  ;;  %v355_v62 = vrot.slane %v1625_v8, %v1628_v31  ;;  %v766_v49 = vld [vmem:[#allocation7 + $0x1d0] sm:$0xff] }
  0xeb   :  { %1028 = vmatprep.subr.mxu0 %v813_v33  ;;  %1098 = vmatpush2.msra.mxu1 %v944_v51  ;;  %v762_v51 = vld [vmem:[#allocation7 + $0x1b0] sm:$0xff] }
  0xec   :  { %1029 = vmatpush2.msra.mxu0 %v812_v35  ;;  %1099 = vmatprep.subr.mxu1 %v941_v54  ;;  %v683_v35 = vrot.slane %v1632_v32, %v1620_v30  ;;  %v758_v54 = vld [vmem:[#allocation7 + $0x190] sm:$0xff] }
  0xed   :  { %1030 = vmatprep.subr.mxu0 %v809_v37  ;;  %1100 = vmatpush2.msra.mxu1 %v940_v56  ;;  %v754_v56 = vld [vmem:[#allocation7 + $0x170] sm:$0xff] }
  0xee   :  { %1031 = vmatpush2.msra.mxu0 %v808_v39  ;;  %1101 = vmatprep.subr.mxu1 %v937_v58  ;;  %v687_v39 = vrot.slane %v1632_v32, %v1628_v31  ;;  %v750_v58 = vld [vmem:[#allocation7 + $0x150] sm:$0xff] }
  0xef   :  { %1032 = vmatprep.subr.mxu0 %v805_v42  ;;  %1102 = vmatpush2.msra.mxu1 %v936_v60  ;;  %v746_v60 = vld [vmem:[#allocation7 + $0x130] sm:$0xff] }
  0xf0   :  { %1033 = vmatpush2.msra.mxu0 %v804_v44  ;;  %1103 = vmatprep.subr.mxu1 %v933_v63  ;;  %v742_v63 = vld [vmem:[#allocation7 + $0x110] sm:$0xff] }
  0xf1   :  { %1034 = vmatprep.subr.mxu0 %v801_v46  ;;  %1104 = vmatpush2.msra.mxu1 %v932_v1  ;;  %v770_v46 = vld [vmem:[#allocation7 + $0x1f0] sm:$0xff] }
  0xf2   :  { %1035 = vmatpush2.msra.mxu0 %v800_v48  ;;  %1105 = vmatprep.subr.mxu1 %v929_v4  ;;  %v767_v48 = vld [vmem:[#allocation7 + $0x1d8] sm:$0xff]  ;;  %v738_v1 = vld [vmem:[#allocation7 + $0xf0] sm:$0xff] }
  0xf3   :  { %1036 = vmatprep.subr.mxu0 %v797_v50  ;;  %1106 = vmatpush2.msra.mxu1 %v928_v6  ;;  %v763_v50 = vld [vmem:[#allocation7 + $0x1b8] sm:$0xff]  ;;  %v734_v4 = vld [vmem:[#allocation7 + $0xd0] sm:$0xff] }
  0xf4   :  { %1037 = vmatpush2.msra.mxu0 %v796_v53  ;;  %1107 = vmatprep.subr.mxu1 %v925_v9  ;;  %v759_v53 = vld [vmem:[#allocation7 + $0x198] sm:$0xff]  ;;  %v730_v6 = vld [vmem:[#allocation7 + $0xb0] sm:$0xff] }
  0xf5   :  { %1038 = vmatprep.subr.mxu0 %v793_v55  ;;  %1108 = vmatpush2.msra.mxu1 %v924_v12  ;;  %v755_v55 = vld [vmem:[#allocation7 + $0x178] sm:$0xff]  ;;  %v726_v9 = vld [vmem:[#allocation7 + $0x90] sm:$0xff] }
  0xf6   :  { %1039 = vmatpush2.msra.mxu0 %v792_v57  ;;  %1109 = vmatprep.subr.mxu1 %v921_v14  ;;  %v751_v57 = vld [vmem:[#allocation7 + $0x158] sm:$0xff]  ;;  %v722_v12 = vld [vmem:[#allocation7 + $0x70] sm:$0xff] }
  0xf7   :  { %1040 = vmatprep.subr.mxu0 %v789_v59  ;;  %1110 = vmatpush2.msra.mxu1 %v920_v16  ;;  %v747_v59 = vld [vmem:[#allocation7 + $0x138] sm:$0xff]  ;;  %v718_v14 = vld [vmem:[#allocation7 + $0x50] sm:$0xff] }
  0xf8   :  { %1041 = vmatpush2.msra.mxu0 %v788_v61  ;;  %1111 = vmatprep.subr.mxu1 %v917_v19  ;;  %v743_v61 = vld [vmem:[#allocation7 + $0x118] sm:$0xff]  ;;  %v714_v16 = vld [vmem:[#allocation7 + $0x30] sm:$0xff] }
  0xf9   :  { %1042 = vmatprep.subr.mxu0 %v785_v0  ;;  %1112 = vmatpush2.msra.mxu1 %v916_v20  ;;  %v739_v0 = vld [vmem:[#allocation7 + $0xf8] sm:$0xff]  ;;  %v834_v20 = vld [vmem:[#allocation7 + $0x3f0] sm:$0xff] }
  0xfa   :  { %1043 = vmatpush2.msra.mxu0 %v784_v2  ;;  %1113 = vmatprep.subr.mxu1 %v913_v21  ;;  %v735_v2 = vld [vmem:[#allocation7 + $0xd8] sm:$0xff] }
  0xfb   :  { %1044 = vmatprep.subr.mxu0 %v781_v5  ;;  %1114 = vmatpush2.msra.mxu1 %v912_v22  ;;  %v731_v5 = vld [vmem:[#allocation7 + $0xb8] sm:$0xff]  ;;  %v830_v22 = vld [vmem:[#allocation7 + $0x3d0] sm:$0xff] }
  0xfc   :  { %1045 = vmatpush2.msra.mxu0 %v780_v7  ;;  %1115 = vmatprep.subr.mxu1 %v909_v23  ;;  %v727_v7 = vld [vmem:[#allocation7 + $0x98] sm:$0xff] }
  0xfd   :  { %1046 = vmatprep.subr.mxu0 %v777_v10  ;;  %1116 = vmatpush2.msra.mxu1 %v908_v24  ;;  %v723_v10 = vld [vmem:[#allocation7 + $0x78] sm:$0xff]  ;;  %v826_v24 = vld [vmem:[#allocation7 + $0x3b0] sm:$0xff] }
  0xfe   :  { %1047 = vmatpush2.msra.mxu0 %v776_v13  ;;  %1117 = vmatprep.subr.mxu1 %v905_v25  ;;  %v719_v13 = vld [vmem:[#allocation7 + $0x58] sm:$0xff] }
  0xff   :  { %1048 = vmatprep.subr.mxu0 %v773_v15  ;;  %1118 = vmatpush2.msra.mxu1 %v904_v26  ;;  %v715_v15 = vld [vmem:[#allocation7 + $0x38] sm:$0xff]  ;;  %v822_v26 = vld [vmem:[#allocation7 + $0x390] sm:$0xff] }
 0x100   :  { %1049 = vmatpush2.msra.mxu0 %v772_v17  ;;  %1119 = vmatprep.subr.mxu1 %v901_v27  ;;  %v711_v17 = vld [vmem:[#allocation7 + $0x18] sm:$0xff] }
 0x101   :  { %1128 = vmatprep.subr.mxu0 %v771_v18  ;;  %1120 = vmatpush2.msra.mxu1 %v900_v28  ;;  %v710_v18 = vld [vmem:[#allocation7 + $0x10] sm:$0xff]  ;;  %v835_v19 = vld [vmem:[#allocation7 + $0x3f8] sm:$0xff] }
 0x102   :  { %1199 = vmatprep.subr.mxu1 %v899_v29  ;;  %v831_v21 = vld [vmem:[#allocation7 + $0x3d8] sm:$0xff]  ;;  %v818_v28 = vld [vmem:[#allocation7 + $0x370] sm:$0xff] }
 0x103   :  { %v827_v23 = vld [vmem:[#allocation7 + $0x3b8] sm:$0xff] }
 0x104   :  { %v823_v25 = vld [vmem:[#allocation7 + $0x398] sm:$0xff] }
 0x105   :  { %v819_v27 = vld [vmem:[#allocation7 + $0x378] sm:$0xff] }
 0x106   :  { %v815_v29 = vld [vmem:[#allocation7 + $0x358] sm:$0xff] }
 0x13e   :  { %v456_v3 = vpop.f32.mrf.mxu0 }
 0x13f   :  { %v457_v33 = vadd.f32 %v456_v3, %v351_v11  ;;  %v814_v11 = vld [vmem:[#allocation7 + $0x350] sm:$0xff] }
 0x140   :  { %v527_v34 = vpop.f32.mrf.mxu1  ;;  %v458_v36 = vpop.f32.mrf.mxu0  ;;  %v810_v3 = vld [vmem:[#allocation7 + $0x330] sm:$0xff] }
 0x141   :  { %v528_v37 = vadd.f32 %v527_v34, %v457_v33  ;;  %v459_v38 = vadd.f32 %v458_v36, %v355_v62  ;;  %v811_v62 = vld [vmem:[#allocation7 + $0x338] sm:$0xff]  ;;  %v806_v34 = vld [vmem:[#allocation7 + $0x310] sm:$0xff] }
 0x142   :  { %v529_v40 = vpop.f32.mrf.mxu1  ;;  %v807_v33 = vld [vmem:[#allocation7 + $0x318] sm:$0xff]  ;;  %v802_v36 = vld [vmem:[#allocation7 + $0x2f0] sm:$0xff] }
 0x143   :  { %v530_v42 = vadd.f32 %v529_v40, %v459_v38  ;;  %v700_v43 = vmul.f32 %v683_v35, %v528_v37  ;;  %vm674_vm0 = vcmp.ge.f32.partialorder %v528_v37, 0.0  ;;  %v803_v35 = vld [vmem:[#allocation7 + $0x2f8] sm:$0xff]  ;;  %v798_v38 = vld [vmem:[#allocation7 + $0x2d0] sm:$0xff]  ;;  %v1644_v40 = vsub.s32 2, %v1592_v41 }
 0x145   :  { %v701_v44 = vmul.f32 %v687_v39, %v530_v42  ;;  %vm675_vm1 = vcmp.ge.f32.partialorder %v530_v42, 0.0  ;;  %v1640_v47 = vsel %vm674_vm0, %v528_v37, %v700_v43  ;;  %v799_v37 = vld [vmem:[#allocation7 + $0x2d8] sm:$0xff] }
 0x146   :  { %v795_v39 = vld [vmem:[#allocation7 + $0x2b8] sm:$0xff] }
 0x147   :  { %v705_v45 = vsel %vm675_vm1, %v530_v42, %v701_v44  ;;  %v794_v42 = vld [vmem:[#allocation7 + $0x2b0] sm:$0xff]  ;;  %v791_v43 = vld [vmem:[#allocation7 + $0x298] sm:$0xff]  ;;  %v1647_v44 = vsub.s32 3, %v1592_v41 }
 0x148   :  { %1050 = vmatprep.mubr.f32.mxu0 %v705_v45 }
 0x149   :  { %1051 = vmatmul.mubr.f32.vlgmr.msra.gmra.mxu0 %v1640_v47 }
 0x14a   :  { %1129 = vmatpush1.msra.mxu0 %v770_v46  ;;  %1192 = vmatprep.mubr.f32.mxu0 %v705_v45  ;;  %v790_v45 = vld [vmem:[#allocation7 + $0x290] sm:$0xff]  ;;  %v359_v46 = vrot.slane %v1625_v8, %v1644_v40 }
 0x14b   :  { %1130 = vmatprep.subr.mxu0 %v767_v48  ;;  %v787_v48 = vld [vmem:[#allocation7 + $0x278] sm:$0xff] }
 0x14c   :  { %1131 = vmatpush1.msra.mxu0 %v766_v49  ;;  %v786_v49 = vld [vmem:[#allocation7 + $0x270] sm:$0xff] }
 0x14d   :  { %1132 = vmatprep.subr.mxu0 %v763_v50  ;;  %v363_v50 = vrot.slane %v1625_v8, %v1647_v44  ;;  %v775_v8 = vld [vmem:[#allocation7 + $0x218] sm:$0xff] }
 0x14e   :  { %1133 = vmatpush1.msra.mxu0 %v762_v51  ;;  %v783_v51 = vld [vmem:[#allocation7 + $0x258] sm:$0xff] }
 0x14f   :  { %1134 = vmatprep.subr.mxu0 %v759_v53 }
 0x150   :  { %1135 = vmatpush1.msra.mxu0 %v758_v54 }
 0x151   :  { %1136 = vmatprep.subr.mxu0 %v755_v55  ;;  %v782_v55 = vld [vmem:[#allocation7 + $0x250] sm:$0xff] }
 0x152   :  { %1137 = vmatpush1.msra.mxu0 %v754_v56  ;;  %v779_v56 = vld [vmem:[#allocation7 + $0x238] sm:$0xff] }
 0x153   :  { %1138 = vmatprep.subr.mxu0 %v751_v57  ;;  %v691_v57 = vrot.slane %v1632_v32, %v1644_v40 }
 0x154   :  { %1139 = vmatpush1.msra.mxu0 %v750_v58 }
 0x155   :  { %1140 = vmatprep.subr.mxu0 %v747_v59  ;;  %v778_v59 = vld [vmem:[#allocation7 + $0x230] sm:$0xff] }
 0x156   :  { %1141 = vmatpush1.msra.mxu0 %v746_v60 }
 0x157   :  { %1142 = vmatprep.subr.mxu0 %v743_v61 }
 0x158   :  { %1143 = vmatpush1.msra.mxu0 %v742_v63  ;;  %v695_v63 = vrot.slane %v1632_v32, %v1647_v44  ;;  %v895_v32 = vld [vmem:[#allocation7 + $0x5d8] sm:$0xff] }
 0x159   :  { %1144 = vmatprep.subr.mxu0 %v739_v0 }
 0x15a   :  { %1145 = vmatpush1.msra.mxu0 %v738_v1  ;;  %v774_v1 = vld [vmem:[#allocation7 + $0x210] sm:$0xff] }
 0x15b   :  { %1146 = vmatprep.subr.mxu0 %v735_v2 }
 0x15c   :  { %1147 = vmatpush1.msra.mxu0 %v734_v4 }
 0x15d   :  { %1148 = vmatprep.subr.mxu0 %v731_v5 }
 0x15e   :  { %1149 = vmatpush1.msra.mxu0 %v730_v6 }
 0x15f   :  { %1150 = vmatprep.subr.mxu0 %v727_v7  ;;  %v898_v7 = vld [vmem:[#allocation7 + $0x5f0] sm:$0xff] }
 0x160   :  { %1151 = vmatpush1.msra.mxu0 %v726_v9 }
 0x161   :  { %1152 = vmatprep.subr.mxu0 %v723_v10  ;;  %v894_v10 = vld [vmem:[#allocation7 + $0x5d0] sm:$0xff] }
 0x162   :  { %1153 = vmatpush1.msra.mxu0 %v722_v12  ;;  %v891_v12 = vld [vmem:[#allocation7 + $0x5b8] sm:$0xff] }
 0x163   :  { %1154 = vmatprep.subr.mxu0 %v719_v13  ;;  %v890_v13 = vld [vmem:[#allocation7 + $0x5b0] sm:$0xff] }
 0x164   :  { %1155 = vmatpush1.msra.mxu0 %v718_v14  ;;  %v887_v14 = vld [vmem:[#allocation7 + $0x598] sm:$0xff] }
 0x165   :  { %1156 = vmatprep.subr.mxu0 %v715_v15  ;;  %v886_v15 = vld [vmem:[#allocation7 + $0x590] sm:$0xff] }
 0x166   :  { %1157 = vmatpush1.msra.mxu0 %v714_v16  ;;  %v882_v16 = vld [vmem:[#allocation7 + $0x570] sm:$0xff] }
 0x167   :  { %1158 = vmatprep.subr.mxu0 %v711_v17  ;;  %v879_v17 = vld [vmem:[#allocation7 + $0x558] sm:$0xff] }
 0x168   :  { %1159 = vmatpush1.msra.mxu0 %v710_v18  ;;  %v878_v18 = vld [vmem:[#allocation7 + $0x550] sm:$0xff] }
 0x169   :  { %1160 = vmatprep.subr.mxu0 %v835_v19  ;;  %v875_v19 = vld [vmem:[#allocation7 + $0x538] sm:$0xff] }
 0x16a   :  { %1161 = vmatpush2.msra.mxu0 %v834_v20  ;;  %v874_v20 = vld [vmem:[#allocation7 + $0x530] sm:$0xff] }
 0x16b   :  { %1162 = vmatprep.subr.mxu0 %v831_v21  ;;  %v871_v21 = vld [vmem:[#allocation7 + $0x518] sm:$0xff] }
 0x16c   :  { %1163 = vmatpush2.msra.mxu0 %v830_v22  ;;  %v870_v22 = vld [vmem:[#allocation7 + $0x510] sm:$0xff] }
 0x16d   :  { %1164 = vmatprep.subr.mxu0 %v827_v23  ;;  %v867_v23 = vld [vmem:[#allocation7 + $0x4f8] sm:$0xff] }
 0x16e   :  { %1165 = vmatpush2.msra.mxu0 %v826_v24  ;;  %v866_v24 = vld [vmem:[#allocation7 + $0x4f0] sm:$0xff] }
 0x16f   :  { %1166 = vmatprep.subr.mxu0 %v823_v25  ;;  %v863_v25 = vld [vmem:[#allocation7 + $0x4d8] sm:$0xff] }
 0x170   :  { %1167 = vmatpush2.msra.mxu0 %v822_v26  ;;  %v862_v26 = vld [vmem:[#allocation7 + $0x4d0] sm:$0xff] }
 0x171   :  { %1168 = vmatprep.subr.mxu0 %v819_v27  ;;  %v859_v27 = vld [vmem:[#allocation7 + $0x4b8] sm:$0xff] }
 0x172   :  { %1169 = vmatpush2.msra.mxu0 %v818_v28  ;;  %v858_v28 = vld [vmem:[#allocation7 + $0x4b0] sm:$0xff] }
 0x173   :  { %1170 = vmatprep.subr.mxu0 %v815_v29  ;;  %v855_v29 = vld [vmem:[#allocation7 + $0x498] sm:$0xff] }
 0x174   :  { %1171 = vmatpush2.msra.mxu0 %v814_v11  ;;  %v854_v11 = vld [vmem:[#allocation7 + $0x490] sm:$0xff] }
 0x175   :  { %1172 = vmatprep.subr.mxu0 %v811_v62  ;;  %v851_v62 = vld [vmem:[#allocation7 + $0x478] sm:$0xff] }
 0x176   :  { %1173 = vmatpush2.msra.mxu0 %v810_v3  ;;  %v850_v3 = vld [vmem:[#allocation7 + $0x470] sm:$0xff] }
 0x177   :  { %1174 = vmatprep.subr.mxu0 %v807_v33  ;;  %v847_v33 = vld [vmem:[#allocation7 + $0x458] sm:$0xff] }
 0x178   :  { %1175 = vmatpush2.msra.mxu0 %v806_v34  ;;  %v846_v34 = vld [vmem:[#allocation7 + $0x450] sm:$0xff] }
 0x179   :  { %1176 = vmatprep.subr.mxu0 %v803_v35  ;;  %v843_v35 = vld [vmem:[#allocation7 + $0x438] sm:$0xff] }
 0x17a   :  { %1177 = vmatpush2.msra.mxu0 %v802_v36  ;;  %v842_v36 = vld [vmem:[#allocation7 + $0x430] sm:$0xff] }
 0x17b   :  { %1178 = vmatprep.subr.mxu0 %v799_v37  ;;  %v839_v37 = vld [vmem:[#allocation7 + $0x418] sm:$0xff] }
 0x17c   :  { %1179 = vmatpush2.msra.mxu0 %v798_v38  ;;  %v838_v38 = vld [vmem:[#allocation7 + $0x410] sm:$0xff] }
 0x17d   :  { %1180 = vmatprep.subr.mxu0 %v795_v39  ;;  %v963_v39 = vld [vmem:[#allocation7 + $0x7f8] sm:$0xff] }
 0x17e   :  { %1181 = vmatpush2.msra.mxu0 %v794_v42  ;;  %v962_v42 = vld [vmem:[#allocation7 + $0x7f0] sm:$0xff] }
 0x17f   :  { %1182 = vmatprep.subr.mxu0 %v791_v43  ;;  %v959_v43 = vld [vmem:[#allocation7 + $0x7d8] sm:$0xff] }
 0x180   :  { %1183 = vmatpush2.msra.mxu0 %v790_v45  ;;  %v598_v53 = vpop.f32.mrf.mxu0  ;;  %v958_v45 = vld [vmem:[#allocation7 + $0x7d0] sm:$0xff] }
 0x181   :  { %v669_v54 = vpop.f32.mrf.mxu1  ;;  %1184 = vmatprep.subr.mxu0 %v787_v48  ;;  %v599_v41 = vadd.f32 %v598_v53, %v359_v46  ;;  %v955_v46 = vld [vmem:[#allocation7 + $0x7b8] sm:$0xff]  ;;  %v954_v48 = vld [vmem:[#allocation7 + $0x7b0] sm:$0xff] }
 0x182   :  { %1185 = vmatpush2.msra.mxu0 %v786_v49  ;;  %v600_v58 = vpop.f32.mrf.mxu0  ;;  %v951_v49 = vld [vmem:[#allocation7 + $0x798] sm:$0xff]  ;;  %v946_v53 = vld [vmem:[#allocation7 + $0x770] sm:$0xff] }
 0x183   :  { %1186 = vmatprep.subr.mxu0 %v783_v51  ;;  %v670_v60 = vadd.f32 %v669_v54, %v599_v41  ;;  %v601_v61 = vadd.f32 %v600_v58, %v363_v50  ;;  %v671_v0 = vpop.f32.mrf.mxu1  ;;  %v950_v50 = vld [vmem:[#allocation7 + $0x790] sm:$0xff]  ;;  %v947_v51 = vld [vmem:[#allocation7 + $0x778] sm:$0xff] }
 0x184   :  { %1187 = vmatpush2.msra.mxu0 %v782_v55  ;;  %v943_v54 = vld [vmem:[#allocation7 + $0x758] sm:$0xff]  ;;  %v942_v55 = vld [vmem:[#allocation7 + $0x750] sm:$0xff] }
 0x185   :  { %1188 = vmatprep.subr.mxu0 %v779_v56  ;;  %v672_v2 = vadd.f32 %v671_v0, %v601_v61  ;;  %v702_v4 = vmul.f32 %v691_v57, %v670_v60  ;;  %vm676_vm2 = vcmp.ge.f32.partialorder %v670_v60, 0.0  ;;  %v939_v41 = vld [vmem:[#allocation7 + $0x738] sm:$0xff]  ;;  %v938_v56 = vld [vmem:[#allocation7 + $0x730] sm:$0xff] }
 0x186   :  { %1189 = vmatpush2.msra.mxu0 %v778_v59  ;;  %v935_v57 = vld [vmem:[#allocation7 + $0x718] sm:$0xff]  ;;  %v934_v58 = vld [vmem:[#allocation7 + $0x710] sm:$0xff] }
 0x187   :  { %1190 = vmatprep.subr.mxu0 %v775_v8  ;;  %v703_v5 = vmul.f32 %v695_v63, %v672_v2  ;;  %vm677_vm3 = vcmp.ge.f32.partialorder %v672_v2, 0.0  ;;  %v1658_v9 = vsel %vm676_vm2, %v670_v60, %v702_v4  ;;  %v931_v59 = vld [vmem:[#allocation7 + $0x6f8] sm:$0xff]  ;;  %v930_v60 = vld [vmem:[#allocation7 + $0x6f0] sm:$0xff] }
 0x188   :  { %1191 = vmatpush2.msra.mxu0 %v774_v1  ;;  %v927_v61 = vld [vmem:[#allocation7 + $0x6d8] sm:$0xff]  ;;  %v926_v63 = vld [vmem:[#allocation7 + $0x6d0] sm:$0xff] }
 0x189   :  { %1193 = vmatmul.mubr.f32.vlgmr.msra.gmra.mxu0 %v1640_v47  ;;  %v707_v6 = vsel %vm677_vm3, %v672_v2, %v703_v5  ;;  %v883_v47 = vld [vmem:[#allocation7 + $0x578] sm:$0xff]  ;;  %v922_v0 = vld [vmem:[#allocation7 + $0x6b0] sm:$0xff] }
 0x18a   :  { %1121 = vmatprep.mubr.f32.mxu1 %v707_v6  ;;  %v923_v8 = vld [vmem:[#allocation7 + $0x6b8] sm:$0xff]  ;;  %v918_v2 = vld [vmem:[#allocation7 + $0x690] sm:$0xff] }
 0x18b   :  { %1122 = vmatmul.mubr.f32.vlgmr.msra.gmra.mxu1 %v1658_v9  ;;  %v919_v1 = vld [vmem:[#allocation7 + $0x698] sm:$0xff]  ;;  %v914_v5 = vld [vmem:[#allocation7 + $0x670] sm:$0xff] }
 0x18c   :  { %1200 = vmatpush1.msra.mxu1 %v898_v7  ;;  %1263 = vmatprep.mubr.f32.mxu1 %v707_v6  ;;  %v915_v4 = vld [vmem:[#allocation7 + $0x678] sm:$0xff]  ;;  %v910_v7 = vld [vmem:[#allocation7 + $0x650] sm:$0xff] }
 0x18d   :  { %1201 = vmatprep.subr.mxu1 %v895_v32  ;;  %v911_v6 = vld [vmem:[#allocation7 + $0x658] sm:$0xff] }
 0x18e   :  { %1202 = vmatpush1.msra.mxu1 %v894_v10  ;;  %v907_v32 = vld [vmem:[#allocation7 + $0x638] sm:$0xff]  ;;  %v906_v10 = vld [vmem:[#allocation7 + $0x630] sm:$0xff] }
 0x18f   :  { %1203 = vmatprep.subr.mxu1 %v891_v12  ;;  %v903_v12 = vld [vmem:[#allocation7 + $0x618] sm:$0xff] }
 0x190   :  { %1204 = vmatpush1.msra.mxu1 %v890_v13  ;;  %v902_v13 = vld [vmem:[#allocation7 + $0x610] sm:$0xff] }
 0x191   :  { %1205 = vmatprep.subr.mxu1 %v887_v14 }
 0x192   :  { %1206 = vmatpush1.msra.mxu1 %v886_v15  ;;  %v964_v15 = vld [vmem:[%s1687_s5] sm:$0xf]  ;;  %s1530_s5 = smov [#allocation11]  }
 0x193   :  { %1207 = vmatprep.subr.mxu1 %v883_v47  ;;  %s1372_s26 = sshll.u32 %s1530_s5, 4  ;;  %s1373_s26 = int_to_ptr.vmem [resolvable:$true] %s1372_s26 }
 0x194   :  { %1208 = vmatpush1.msra.mxu1 %v882_v16  ;;  %s1494_s27 = scalar_lea.vmem %s1373_s26, 128  ;;  %p1499_p12 = scmp.lt.s32.totalorder %s1373_s26, %s1373_s26 }
 0x195   :  { %1209 = vmatprep.subr.mxu1 %v879_v17  ;;  %v973_v17 = vrot.slane %v964_v15, %v1628_v31  ;;  %p1495_p11 = scmp.ne.s32.totalorder %s1373_s26, %s1494_s27  ;;  %p1500_p13 = scmp.lt.s32.totalorder %s1494_s27, %s1494_s27 }
 0x196   :  { %1210 = vmatpush1.msra.mxu1 %v878_v18 }
 0x197   :  { %1211 = vmatprep.subr.mxu1 %v875_v19  ;;  %v969_v19 = vrot.slane %v964_v15, %v1620_v30  ;;  %p1501_p0 = por %p1500_p13, %p1499_p12 }
 0x198   :  { %1212 = vmatpush1.msra.mxu1 %v874_v20 }
 0x199   :  { %1213 = vmatprep.subr.mxu1 %v871_v21  ;;  %p1502_p1 = pnand %p1501_p0, %p1495_p11 }
 0x19a   :  { %1214 = vmatpush1.msra.mxu1 %v870_v22  ;;  %v977_v22 = vrot.slane %v964_v15, %v1644_v40 }
 0x19b   :  { %1215 = vmatprep.subr.mxu1 %v867_v23  ;;  %v981_v23 = vrot.slane %v964_v15, %v1647_v44 }
 0x19c   :  { %1216 = vmatpush1.msra.mxu1 %v866_v24 }
 0x19d   :  { %1217 = vmatprep.subr.mxu1 %v863_v25 }
 0x19e   :  { %1218 = vmatpush1.msra.mxu1 %v862_v26 }
 0x19f   :  { %1219 = vmatprep.subr.mxu1 %v859_v27 }
 0x1a0   :  { %1220 = vmatpush1.msra.mxu1 %v858_v28 }
 0x1a1   :  { %1221 = vmatprep.subr.mxu1 %v855_v29 }
 0x1a2   :  { %1222 = vmatpush1.msra.mxu1 %v854_v11 }
 0x1a3   :  { %1223 = vmatprep.subr.mxu1 %v851_v62 }
 0x1a4   :  { %1224 = vmatpush1.msra.mxu1 %v850_v3 }
 0x1a5   :  { %1225 = vmatprep.subr.mxu1 %v847_v33 }
 0x1a6   :  { %1226 = vmatpush1.msra.mxu1 %v846_v34 }
 0x1a7   :  { %1227 = vmatprep.subr.mxu1 %v843_v35 }
 0x1a8   :  { %1228 = vmatpush1.msra.mxu1 %v842_v36 }
 0x1a9   :  { %1229 = vmatprep.subr.mxu1 %v839_v37 }
 0x1aa   :  { %1230 = vmatpush1.msra.mxu1 %v838_v38  ;;  %v1294_v38 = vld [vmem:[#allocation10] sm:$0xf] }
 0x1ab   :  { %1231 = vmatprep.subr.mxu1 %v963_v39  ;;  %v1393_v39 = vld [vmem:[#allocation2] sm:$0xff] }
 0x1ac   :  { %1232 = vmatpush2.msra.mxu1 %v962_v42 }
 0x1ad   :  { %1233 = vmatprep.subr.mxu1 %v959_v43 }
 0x1ae   :  { %1234 = vmatpush2.msra.mxu1 %v958_v45  ;;  %v1299_v45 = vrot.slane %v1294_v38, %v1620_v30 }
 0x1af   :  { %1235 = vmatprep.subr.mxu1 %v955_v46  ;;  %v1303_v46 = vrot.slane %v1294_v38, %v1628_v31 }
 0x1b0   :  { %1236 = vmatpush2.msra.mxu1 %v954_v48 }
 0x1b1   :  { %1237 = vmatprep.subr.mxu1 %v951_v49  ;;  %v1307_v49 = vrot.slane %v1294_v38, %v1644_v40 }
 0x1b2   :  { %1238 = vmatpush2.msra.mxu1 %v950_v50  ;;  %v1311_v50 = vrot.slane %v1294_v38, %v1647_v44 }
 0x1b3   :  { %1239 = vmatprep.subr.mxu1 %v947_v51 }
 0x1b4   :  { %1240 = vmatpush2.msra.mxu1 %v946_v53 }
 0x1b5   :  { %1241 = vmatprep.subr.mxu1 %v943_v54 }
 0x1b6   :  { %1242 = vmatpush2.msra.mxu1 %v942_v55 }
 0x1b7   :  { %1243 = vmatprep.subr.mxu1 %v939_v41 }
 0x1b8   :  { %1244 = vmatpush2.msra.mxu1 %v938_v56 }
 0x1b9   :  { %1245 = vmatprep.subr.mxu1 %v935_v57 }
 0x1ba   :  { %1246 = vmatpush2.msra.mxu1 %v934_v58 }
 0x1bb   :  { %1247 = vmatprep.subr.mxu1 %v931_v59 }
 0x1bc   :  { %1248 = vmatpush2.msra.mxu1 %v930_v60 }
 0x1bd   :  { %1249 = vmatprep.subr.mxu1 %v927_v61 }
 0x1be   :  { %1250 = vmatpush2.msra.mxu1 %v926_v63 }
 0x1bf   :  { %1251 = vmatprep.subr.mxu1 %v923_v8 }
 0x1c0   :  { %1252 = vmatpush2.msra.mxu1 %v922_v0 }
 0x1c1   :  { %1253 = vmatprep.subr.mxu1 %v919_v1 }
 0x1c2   :  { %1254 = vmatpush2.msra.mxu1 %v918_v2 }
 0x1c3   :  { %1255 = vmatprep.subr.mxu1 %v915_v4 }
 0x1c4   :  { %1256 = vmatpush2.msra.mxu1 %v914_v5 }
 0x1c5   :  { %1257 = vmatprep.subr.mxu1 %v911_v6 }
 0x1c6   :  { %1258 = vmatpush2.msra.mxu1 %v910_v7 }
 0x1c7   :  { %1259 = vmatprep.subr.mxu1 %v907_v32 }
 0x1c8   :  { %1260 = vmatpush2.msra.mxu1 %v906_v10 }
 0x1c9   :  { %1261 = vmatprep.subr.mxu1 %v903_v12 }
 0x1ca   :  { %1262 = vmatpush2.msra.mxu1 %v902_v13 }
 0x1cb   :  { %1264 = vmatmul.mubr.f32.vlgmr.msra.gmra.mxu1 %v1658_v9 }
 0x209   :  { %v1052_v14 = vpop.f32.mrf.mxu0 }
 0x20a   :  { %v1053_v9 = vadd.f32 %v1052_v14, %v969_v19 }
 0x20b   :  { %v1054_v47 = vpop.f32.mrf.mxu0 }
 0x20c   :  { %v1055_v21 = vadd.f32 %v1054_v47, %v973_v17 }
 0x249   :  { %v1194_v18 = vpop.f32.mrf.mxu0 }
 0x24a   :  { %v1195_v27 = vadd.f32 %v1194_v18, %v977_v22 }
 0x24b   :  { %v1123_v16 = vpop.f32.mrf.mxu1  ;;  %v1196_v24 = vpop.f32.mrf.mxu0 }
 0x24c   :  { %v1124_v28 = vadd.f32 %v1123_v16, %v1053_v9  ;;  %v1197_v29 = vadd.f32 %v1196_v24, %v981_v23 }
 0x24d   :  { %v1125_v20 = vpop.f32.mrf.mxu1 }
 0x24e   :  { %v1126_v25 = vadd.f32 %v1125_v20, %v1055_v21 }
 0x250   :  { %v1274_v62 = vcombine.low %v1124_v28, %v1126_v25 }
 0x252   :  { %v1282_v35 = vrot.slane %v1274_v62, %v1595_v52 }
 0x28b   :  { %v1265_v26 = vpop.f32.mrf.mxu1 }
 0x28c   :  { %v1266_v3 = vadd.f32 %v1265_v26, %v1195_v27 }
 0x28d   :  { %v1267_v11 = vpop.f32.mrf.mxu1 }
 0x28e   :  { %v1268_v33 = vadd.f32 %v1267_v11, %v1197_v29 }
 0x290   :  { %v1275_v34 = vcombine.low %v1266_v3, %v1268_v33 }
 0x292   :  { %v1289_v36 = vrot.slane %v1275_v34, %v1595_v52 }
 0x294   :  { %v1290_v37 = vcombine.low %v1282_v35, %v1289_v36 }
 0x296   :  { %v1292_v42 = vadd.f32 %v1393_v39, %v1290_v37 }
 0x298   :  { %v1317_v43 = vcombine.high %v1292_v42, %v1292_v42  ;;  %v1324_v48 = vrot.slane %v1292_v42, %v1595_v52  ;;  %vm1293_vm4 = vcmp.ge.f32.partialorder %v1292_v42, 0.0 }
 0x29a   :  { %v1331_v51 = vrot.slane %v1317_v43, %v1595_v52  ;;  %v1332_v53 = vcombine.high %v1324_v48, %v1324_v48  ;;  %v1338_v55 = vmul.f32 %v1324_v48, %v1299_v45 }
 0x29c   :  { %v1333_v54 = vcombine.high %v1331_v51, %v1331_v51  ;;  %v1339_v41 = vmul.f32 %v1332_v53, %v1303_v46  ;;  %v1340_v56 = vmul.f32 %v1331_v51, %v1307_v49 }
 0x29e   :  { %v1341_v57 = vmul.f32 %v1333_v54, %v1311_v50  ;;  %v1346_v58 = vcombine.low %v1338_v55, %v1339_v41 }
 0x2a0   :  { %v1347_v59 = vcombine.low %v1340_v56, %v1341_v57  ;;  %v1354_v30 = vrot.slane %v1346_v58, %v1595_v52 }
 0x2a2   :  { %v1361_v31 = vrot.slane %v1347_v59, %v1595_v52 }
 0x2a4   :  { %v1362_v60 = vcombine.low %v1354_v30, %v1361_v31 }
 0x2a6   :  { %v1364_v40 = vsel %vm1293_vm4, %v1292_v42, %v1362_v60 }
 0x2a7   :  { %1365 = vst [vmem:[#allocation11] sm:$0xff] %v1364_v40 }
 0x2a8   :  { %1505 = shalt.err (!%p1502_p1)
}
 0x2a9   :  { %1375 = dma.vmem_to_hbm [thread:$0]  %s1373_s26, 128, %s1689_s7, [#allocation4]  }
 0x2aa   :  { %1520 = dma.done.wait [#allocation4], 128  }
 0x2ab   :  { %1521 = vsyncadd [#allocation4], 4294967168 }
 0x2ac   :  { %1379 = vsyncpa [#allocation3], 1 }
 0x2ad   :  { %1380 = vsyncpa [#allocation6], 1 }
 0x2ae   :  { %1381 = vsyncpa [#allocation9], 1 }
 0x2af   :  { %1382 = vsyncpa [#allocation4], 1 }

</bundles_post_ra>
